<compile_context>
chip_gen: v6e
topology: v6e:2x2x1
jax: 0.10.0
libtpu: 0.0.40
codegen_flags: <defaults>
</compile_context>

<pallas_src>
import functools

import jax
import jax.numpy as jnp
from jax.experimental import pallas as pl
from jax.experimental.pallas import tpu as pltpu

BN_EPS = 1e-5


def _round_up(v, m):
    return (v + m - 1) // m * m


# ----------------------------------------------------------------------------
# Kernel 1: generic fused matmul + folded-BN affine + activation
# ----------------------------------------------------------------------------


def _mm_affine_act_kernel(x_ref, w_ref, s_ref, b_ref, o_ref, *, act):
    y = jnp.dot(x_ref[...], w_ref[...], preferred_element_type=jnp.float32)
    y = y * s_ref[...] + b_ref[...]          # f32 epilogue (v5e-friendly)
    if act == "relu":
        y = jnp.maximum(y, 0.0)
    elif act == "hswish":
        y = y * jnp.clip(y + 3.0, 0.0, 6.0) * (1.0 / 6.0)
    elif act == "sigmoid":
        y = jax.nn.sigmoid(y)
    o_ref[...] = y.astype(o_ref.dtype)


def matmul_affine_act(x, w, scale, bias, act="none"):
    """y = act((x @ w) * scale + bias).  bf16 MXU operands, f32 accumulate/epilogue."""
    M, K = x.shape
    Kw, N = w.shape
    assert K == Kw
    if M > 8:
        # size tm to the real M and keep >=2 grid steps on the parallel axis (v7x 2 TCs)
        tm = min(128, _round_up(pl.cdiv(M, 2), 8))
    else:
        tm = _round_up(max(M, 1), 8)
    Mp = _round_up(M, tm)
    if Mp != M:
        x = jnp.pad(x, ((0, Mp - M), (0, 0)))
    out = pl.pallas_call(
        functools.partial(_mm_affine_act_kernel, act=act),
        out_shape=jax.ShapeDtypeStruct((Mp, N), jnp.float32),
        grid=(Mp // tm,),
        in_specs=[
            pl.BlockSpec((tm, K), lambda i: (i, 0)),
            pl.BlockSpec((K, N), lambda i: (0, 0)),
            pl.BlockSpec((1, N), lambda i: (0, 0)),
            pl.BlockSpec((1, N), lambda i: (0, 0)),
        ],
        out_specs=pl.BlockSpec((tm, N), lambda i: (i, 0)),
        compiler_params=pltpu.CompilerParams(
            dimension_semantics=("parallel",),
            vmem_limit_bytes=32 * 1024 * 1024),
        cost_estimate=pl.CostEstimate(
            flops=2 * Mp * K * N, transcendentals=0,
            bytes_accessed=Mp * K * 2 + K * N * 2 + 2 * N * 4 + Mp * N * 4),
    )(x.astype(jnp.bfloat16), w.astype(jnp.bfloat16),
      scale.reshape(1, N).astype(jnp.float32),
      bias.reshape(1, N).astype(jnp.float32))
    return out[:M] if Mp != M else out


# ----------------------------------------------------------------------------
# Kernel 2: one fused ASPP branch per grid step (conv + BN + ReLU [+ CoordAtt])
# ----------------------------------------------------------------------------


def _aspp_branch_kernel(patch_ref, w_ref, s_ref, bias_ref,
                        c1w_ref, c1s_ref, c1b_ref,
                        wh_ref, bh_ref, ww_ref, bw_ref,
                        o_ref, *, N, H, W):
    """branch 0: 1x1 conv + BN + ReLU (weight zero-padded onto the centre 3x3 tap).
    branch b>0: dilated 3x3 conv + BN + ReLU + full CoordAtt, all in VMEM."""
    br = pl.program_id(0)
    # conv (im2col matmul, bf16 MXU) + folded BN + ReLU -> (M, C) f32
    y = jnp.dot(patch_ref[...], w_ref[...], preferred_element_type=jnp.float32)
    y = jnp.maximum(y * s_ref[...] + bias_ref[...], 0.0)
    C = y.shape[-1]

    @pl.when(br == 0)
    def _():
        o_ref[...] = y

    @pl.when(br > 0)
    def _():
        x4 = y.reshape(N, H, W, C)
        # channels stay on lanes; pools reduce the sublane / major axes (no transpose)
        xh = jnp.mean(x4, axis=2)                       # (N, H, C)  pool over W
        xw = jnp.mean(x4, axis=1)                       # (N, W, C)  pool over H
        yc = jnp.concatenate([xh, xw], axis=1).reshape(N * (H + W), C)
        t = jnp.dot(yc, c1w_ref[...], preferred_element_type=jnp.float32)
        t = t * c1s_ref[...] + c1b_ref[...]
        t = t * jnp.clip(t + 3.0, 0.0, 6.0) * (1.0 / 6.0)    # h-swish
        mip = t.shape[-1]
        t3 = t.reshape(N, H + W, mip)
        th = t3[:, :H, :].reshape(N * H, mip)
        tw = t3[:, H:, :].reshape(N * W, mip)
        a_h = jax.nn.sigmoid(
            jnp.dot(th, wh_ref[...], preferred_element_type=jnp.float32) + bh_ref[...])
        a_w = jax.nn.sigmoid(
            jnp.dot(tw, ww_ref[...], preferred_element_type=jnp.float32) + bw_ref[...])
        g = x4 * a_h.reshape(N, H, 1, C) * a_w.reshape(N, 1, W, C)
        o_ref[...] = g.reshape(N * H * W, C)


def im2col_dilated3x3(x, dilation):
    """x: (N,H,W,C), padding=dilation, stride 1 -> (N*H*W, 9*C), tap order [kh, kw, c]."""
    N, H, W, C = x.shape
    d = dilation
    xp = jnp.pad(x, ((0, 0), (d, d), (d, d), (0, 0)))
    cols = []
    for kh in range(3):
        for kw in range(3):
            cols.append(xp[:, kh * d:kh * d + H, kw * d:kw * d + W, :])
    return jnp.concatenate(cols, axis=-1).reshape(N * H * W, 9 * C)


def im2col_stride(x, k):
    """kxk conv with stride k (patchify).  x: (N,H,W,C) -> (N*Ho*Wo, k*k*C)."""
    N, H, W, C = x.shape
    Ho, Wo = H // k, W // k
    cols = []
    for kh in range(k):
        for kw in range(k):
            cols.append(x[:, kh:H:k, kw:W:k, :])
    return jnp.concatenate(cols, axis=-1).reshape(N * Ho * Wo, k * k * C), Ho, Wo


def aspp_branches(x, p, rates=(2, 3, 4)):
    """All CA_ASPP branches (1x1 + dilated+CoordAtt) in ONE pallas_call.
    Returns the channel-concatenated result (N*H*W, 4*Cout)."""
    N, H, W, Cin = x.shape
    NB, K, Cout = p["w_all"].shape
    assert K == 9 * Cin
    mip = p["ca_c1w"].shape[-1]
    M = N * H * W
    # im2col for the dilated branches, stacked on a branch axis.  Branch 0 (the 1x1
    # conv) reuses the first dilation's patches: its weight only touches the centre tap.
    # TODO(synk): for large feature maps replace this HBM im2col with an in-kernel 9-tap loop.
    patches = jnp.stack([im2col_dilated3x3(x, r) for r in rates], axis=0)
    patches = patches.astype(jnp.bfloat16)                       # (NB-1, M, 9*Cin)

    def pat_idx(b):
        return (jnp.maximum(b - 1, 0), 0, 0)

    def br_idx(b):
        return (b, 0, 0)

    out = pl.pallas_call(
        functools.partial(_aspp_branch_kernel, N=N, H=H, W=W),
        out_shape=jax.ShapeDtypeStruct((NB, M, Cout), jnp.float32),
        grid=(NB,),
        in_specs=[
            pl.BlockSpec((None, M, K), pat_idx),
            pl.BlockSpec((None, K, Cout), br_idx),
            pl.BlockSpec((None, 1, Cout), br_idx),
            pl.BlockSpec((None, 1, Cout), br_idx),
            pl.BlockSpec((None, Cout, mip), br_idx),
            pl.BlockSpec((None, 1, mip), br_idx),
            pl.BlockSpec((None, 1, mip), br_idx),
            pl.BlockSpec((None, mip, Cout), br_idx),
            pl.BlockSpec((None, 1, Cout), br_idx),
            pl.BlockSpec((None, mip, Cout), br_idx),
            pl.BlockSpec((None, 1, Cout), br_idx),
        ],
        out_specs=pl.BlockSpec((None, M, Cout), br_idx),
        compiler_params=pltpu.CompilerParams(
            dimension_semantics=("parallel",),
            vmem_limit_bytes=32 * 1024 * 1024),
        cost_estimate=pl.CostEstimate(
            flops=2 * NB * M * K * Cout, transcendentals=NB * M * Cout,
            bytes_accessed=(NB - 1) * M * K * 2 + NB * K * Cout * 2 + NB * M * Cout * 4),
    )(patches, p["w_all"].astype(jnp.bfloat16), p["scale_all"], p["bias_all"],
      p["ca_c1w"], p["ca_c1s"], p["ca_c1b"],
      p["ca_wh"], p["ca_bh"], p["ca_ww"], p["ca_bw"])
    # channel concat in PyTorch order [1x1, rate2, rate3, rate4]
    return jnp.transpose(out, (1, 0, 2)).reshape(M, NB * Cout)


# ----------------------------------------------------------------------------
# Kernel 3: fuse conv (k2 s2) + BN + ReLU + global avg-pool + feature_fc + heads
# ----------------------------------------------------------------------------


def _fuse_tail_kernel(p_ref, fw_ref, fs_ref, fb_ref,
                      fcw_ref, fcb_ref, hw_ref, hb_ref, o_ref, *, N, HW):
    y = jnp.dot(p_ref[...], fw_ref[...], preferred_element_type=jnp.float32)
    y = jnp.maximum(y * fs_ref[...] + fb_ref[...], 0.0)            # (N*HW, Cf)
    # TODO(synk): F.dropout(p=0.5, training=True) applied as identity (stochastic).
    pooled = jnp.mean(y.reshape(N, HW, y.shape[-1]), axis=1)       # AdaptiveAvgPool2d(1)
    feat = jnp.dot(pooled, fcw_ref[...], preferred_element_type=jnp.float32) + fcb_ref[...]
    o_ref[...] = jnp.dot(feat, hw_ref[...], preferred_element_type=jnp.float32) + hb_ref[...]


def fuse_tail(patches, params, N, HW):
    aspp = params["aspp"]
    Cf = aspp["fuse_w"].shape[1]
    return pl.pallas_call(
        functools.partial(_fuse_tail_kernel, N=N, HW=HW),
        out_shape=jax.ShapeDtypeStruct((N, 6), jnp.float32),
    )(patches.astype(jnp.bfloat16),
      aspp["fuse_w"].astype(jnp.bfloat16),
      aspp["fuse_scale"].reshape(1, Cf),
      aspp["fuse_bias"].reshape(1, Cf),
      params["fc_w"], params["fc_b"].reshape(1, Cf),
      params["head_w"], params["head_b"].reshape(1, 6))


# ----------------------------------------------------------------------------
# Forward
# ----------------------------------------------------------------------------


def caloc_resnet50_forward(params, x_nchw):
    x = jnp.transpose(x_nchw, (0, 2, 3, 1)).astype(jnp.float32)    # NCHW -> NHWC
    N = x.shape[0]
    feat_dim = params["backbone_w"].shape[1]
    # --- backbone stub (stand-in for the external ResNet50 up to layer4) ---
    patches, Ho, Wo = im2col_stride(x, 4)
    f = matmul_affine_act(patches, params["backbone_w"],
                          jnp.ones((feat_dim,), jnp.float32),
                          jnp.zeros((feat_dim,), jnp.float32), act="relu")
    f = f.reshape(N, Ho, Wo, feat_dim)
    # --- CA_ASPP branches: one fused pallas_call (4-branch parallel grid) ---
    cat = aspp_branches(f, params["aspp"]).reshape(N, Ho, Wo, -1)
    # --- fuse conv + pool + feature_fc + fc_xyz/fc_wpqr: one fused pallas_call ---
    patches_f, Hf, Wf = im2col_stride(cat, 2)
    return fuse_tail(patches_f, params, N, Hf * Wf)   # (N, 6) == cat([xyz, wpqr], dim=1)


# ----------------------------------------------------------------------------
# Deterministic parameter initialization (kaiming-normal weights, zero biases,
# BatchNorm eval-mode defaults folded into per-channel scale/bias).
# ----------------------------------------------------------------------------


def make_params(key, in_ch=4, patch=4, feat_dim=64, aspp_out=32,
                rates=(2, 3, 4), reduction=32):
    keys = iter(jax.random.split(key, 64))

    def kaiming(shape, fan_in):
        return jax.random.normal(next(keys), shape, jnp.float32) * jnp.sqrt(2.0 / fan_in)

    def bn_scale(c):
        return jnp.full((c,), (1.0 + BN_EPS) ** -0.5, jnp.float32)

    mip = max(8, aspp_out // reduction)
    NB = 1 + len(rates)
    K = 9 * feat_dim

    p = {"backbone_w": kaiming((in_ch * patch * patch, feat_dim), in_ch * patch * patch)}

    # branch conv weights; branch 0 is the 1x1 conv, placed on the centre 3x3 tap.
    w0 = jnp.zeros((K, aspp_out), jnp.float32)
    w0 = w0.at[4 * feat_dim:5 * feat_dim].set(kaiming((feat_dim, aspp_out), feat_dim))
    w_dil = [kaiming((K, aspp_out), K) for _ in rates]
    aspp = {
        "w_all": jnp.stack([w0] + w_dil, axis=0),                         # (NB, K, Cout)
        "scale_all": jnp.tile(bn_scale(aspp_out)[None, None, :], (NB, 1, 1)),
        "bias_all": jnp.zeros((NB, 1, aspp_out), jnp.float32),
        # CoordAtt params (entry 0 is a dummy: the 1x1 branch has no CoordAtt)
        "ca_c1w": jnp.stack([kaiming((aspp_out, mip), aspp_out) for _ in range(NB)], 0),
        "ca_c1s": jnp.tile(bn_scale(mip)[None, None, :], (NB, 1, 1)),
        "ca_c1b": jnp.zeros((NB, 1, mip), jnp.float32),
        "ca_wh": jnp.stack([kaiming((mip, aspp_out), mip) for _ in range(NB)], 0),
        "ca_bh": jnp.zeros((NB, 1, aspp_out), jnp.float32),
        "ca_ww": jnp.stack([kaiming((mip, aspp_out), mip) for _ in range(NB)], 0),
        "ca_bw": jnp.zeros((NB, 1, aspp_out), jnp.float32),
        "fuse_w": kaiming((NB * aspp_out * 4, feat_dim), NB * aspp_out * 4),
        "fuse_scale": bn_scale(feat_dim),
        "fuse_bias": jnp.zeros((feat_dim,), jnp.float32),
    }
    p["aspp"] = aspp
    p["fc_w"] = kaiming((feat_dim, feat_dim), feat_dim)
    p["fc_b"] = jnp.zeros((feat_dim,), jnp.float32)
    p["head_w"] = kaiming((feat_dim, 6), feat_dim)     # fc_xyz (3) ++ fc_wpqr (3)
    p["head_b"] = jnp.zeros((6,), jnp.float32)
    return p


# ----------------------------------------------------------------------------


if __name__ == "__main__":
    key = jax.random.PRNGKey(0)
    k_param, k_x = jax.random.split(key)
    params = make_params(k_param)
    # small input: batch=2, channels=4, spatial=32 (stub backbone downsamples x4 -> 8x8)
    x = jax.random.normal(k_x, (2, 4, 32, 32), jnp.float32)

    fwd = jax.jit(caloc_resnet50_forward)
    out = fwd(params, x)
    jax.block_until_ready(out)
    assert out.shape == (2, 6), out.shape
    print("KERNEL_OK")
</pallas_src>

<mosaic_0001>
module attributes {stable_mosaic.version = 11 : i64} {
  func.func @_mm_affine_act_kernel(%arg0: i32, %arg1: memref<64x64xbf16, #tpu.memory_space<vmem>>, %arg2: memref<64x64xbf16, #tpu.memory_space<vmem>>, %arg3: memref<1x64xf32, #tpu.memory_space<vmem>>, %arg4: memref<1x64xf32, #tpu.memory_space<vmem>>, %arg5: memref<64x64xf32, #tpu.memory_space<vmem>>) attributes {dimension_semantics = [#tpu.dimension_semantics<parallel>], iteration_bounds = array<i64: 2>, scalar_prefetch = 0 : i64, scratch_operands = 0 : i64, tpu.core_type = #tpu.core_type<tc>, window_params = [{transform_indices = @transform_0, window_bounds = array<i64: 64, 64>}, {pipeline_mode = #tpu.pipeline_mode<synchronous>, transform_indices = @transform_1, window_bounds = array<i64: 64, 64>}, {pipeline_mode = #tpu.pipeline_mode<synchronous>, transform_indices = @transform_2, window_bounds = array<i64: 1, 64>}, {pipeline_mode = #tpu.pipeline_mode<synchronous>, transform_indices = @transform_3, window_bounds = array<i64: 1, 64>}, {transform_indices = @transform_4, window_bounds = array<i64: 64, 64>}]} {
    %c0 = arith.constant 0 : index
    %c0_0 = arith.constant 0 : index
    %0 = vector.load %arg1[%c0, %c0_0] : memref<64x64xbf16, #tpu.memory_space<vmem>>, vector<64x64xbf16>
    %c0_1 = arith.constant 0 : index
    %c0_2 = arith.constant 0 : index
    %1 = vector.load %arg2[%c0_1, %c0_2] : memref<64x64xbf16, #tpu.memory_space<vmem>>, vector<64x64xbf16>
    %cst = arith.constant dense<0.000000e+00> : vector<64x64xf32>
    %2 = tpu.matmul %0, %1, %cst {dimension_numbers = #tpu.dot_dimension_numbers<[1], [0], [0], [1], [0, 0, 1, 1], [], []>} : vector<64x64xbf16>, vector<64x64xbf16>, vector<64x64xf32> -> vector<64x64xf32>
    %c0_3 = arith.constant 0 : index
    %c0_4 = arith.constant 0 : index
    %3 = vector.load %arg3[%c0_3, %c0_4] : memref<1x64xf32, #tpu.memory_space<vmem>>, vector<1x64xf32>
    %4 = vector.broadcast %3 : vector<1x64xf32> to vector<64x64xf32>
    %5 = arith.mulf %2, %4 : vector<64x64xf32>
    %c0_5 = arith.constant 0 : index
    %c0_6 = arith.constant 0 : index
    %6 = vector.load %arg4[%c0_5, %c0_6] : memref<1x64xf32, #tpu.memory_space<vmem>>, vector<1x64xf32>
    %7 = vector.broadcast %6 : vector<1x64xf32> to vector<64x64xf32>
    %8 = arith.addf %5, %7 : vector<64x64xf32>
    %cst_7 = arith.constant 0.000000e+00 : f32
    %9 = vector.broadcast %cst_7 : f32 to vector<64x64xf32>
    %10 = arith.maximumf %8, %9 : vector<64x64xf32>
    %c0_8 = arith.constant 0 : index
    %c0_9 = arith.constant 0 : index
    %11 = vector.load %arg5[%c0_8, %c0_9] : memref<64x64xf32, #tpu.memory_space<vmem>>, vector<64x64xf32>
    tpu.vector_store %arg5[%c0_8, %c0_9], %10 {strides = array<i32>} : memref<64x64xf32, #tpu.memory_space<vmem>>, vector<64x64xf32>,
    return
  }
  func.func @transform_0(%arg0: i32) -> (i32, i32) {
    %c0_i32 = arith.constant 0 : i32
    %c0_i32_0 = arith.constant 0 : i32
    return %arg0, %c0_i32 : i32, i32
  }
  func.func @transform_1(%arg0: i32) -> (i32, i32) {
    %c0_i32 = arith.constant 0 : i32
    %c0_i32_0 = arith.constant 0 : i32
    %c0_i32_1 = arith.constant 0 : i32
    return %c0_i32, %c0_i32_0 : i32, i32
  }
  func.func @transform_2(%arg0: i32) -> (i32, i32) {
    %c0_i32 = arith.constant 0 : i32
    %c0_i32_0 = arith.constant 0 : i32
    %c0_i32_1 = arith.constant 0 : i32
    return %c0_i32, %c0_i32_0 : i32, i32
  }
  func.func @transform_3(%arg0: i32) -> (i32, i32) {
    %c0_i32 = arith.constant 0 : i32
    %c0_i32_0 = arith.constant 0 : i32
    %c0_i32_1 = arith.constant 0 : i32
    return %c0_i32, %c0_i32_0 : i32, i32
  }
  func.func @transform_4(%arg0: i32) -> (i32, i32) {
    %c0_i32 = arith.constant 0 : i32
    %c0_i32_0 = arith.constant 0 : i32
    return %arg0, %c0_i32 : i32, i32
  }
}

module attributes {stable_mosaic.version = 11 : i64} {
  func.func @_aspp_branch_kernel(%arg0: i32, %arg1: memref<1x128x576xbf16, #tpu.memory_space<vmem>>, %arg2: memref<1x576x32xbf16, #tpu.memory_space<vmem>>, %arg3: memref<1x1x32xf32, #tpu.memory_space<vmem>>, %arg4: memref<1x1x32xf32, #tpu.memory_space<vmem>>, %arg5: memref<1x32x8xf32, #tpu.memory_space<vmem>>, %arg6: memref<1x1x8xf32, #tpu.memory_space<vmem>>, %arg7: memref<1x1x8xf32, #tpu.memory_space<vmem>>, %arg8: memref<1x8x32xf32, #tpu.memory_space<vmem>>, %arg9: memref<1x1x32xf32, #tpu.memory_space<vmem>>, %arg10: memref<1x8x32xf32, #tpu.memory_space<vmem>>, %arg11: memref<1x1x32xf32, #tpu.memory_space<vmem>>, %arg12: memref<1x128x32xf32, #tpu.memory_space<vmem>>) attributes {dimension_semantics = [#tpu.dimension_semantics<parallel>], iteration_bounds = array<i64: 4>, scalar_prefetch = 0 : i64, scratch_operands = 0 : i64, tpu.core_type = #tpu.core_type<tc>, window_params = [{transform_indices = @transform_0, window_bounds = array<i64: 1, 128, 576>}, {transform_indices = @transform_1, window_bounds = array<i64: 1, 576, 32>}, {transform_indices = @transform_2, window_bounds = array<i64: 1, 1, 32>}, {transform_indices = @transform_3, window_bounds = array<i64: 1, 1, 32>}, {transform_indices = @transform_4, window_bounds = array<i64: 1, 32, 8>}, {transform_indices = @transform_5, window_bounds = array<i64: 1, 1, 8>}, {transform_indices = @transform_6, window_bounds = array<i64: 1, 1, 8>}, {transform_indices = @transform_7, window_bounds = array<i64: 1, 8, 32>}, {transform_indices = @transform_8, window_bounds = array<i64: 1, 1, 32>}, {transform_indices = @transform_9, window_bounds = array<i64: 1, 8, 32>}, {transform_indices = @transform_10, window_bounds = array<i64: 1, 1, 32>}, {transform_indices = @transform_11, window_bounds = array<i64: 1, 128, 32>}]} {
    %c0 = arith.constant 0 : index
    %c0_0 = arith.constant 0 : index
    %c0_1 = arith.constant 0 : index
    %0 = vector.load %arg1[%c0, %c0_0, %c0_1] : memref<1x128x576xbf16, #tpu.memory_space<vmem>>, vector<1x128x576xbf16>
    %1 = vector.shape_cast %0 : vector<1x128x576xbf16> to vector<128x576xbf16>
    %c0_2 = arith.constant 0 : index
    %c0_3 = arith.constant 0 : index
    %c0_4 = arith.constant 0 : index
    %2 = vector.load %arg2[%c0_2, %c0_3, %c0_4] : memref<1x576x32xbf16, #tpu.memory_space<vmem>>, vector<1x576x32xbf16>
    %3 = vector.shape_cast %2 : vector<1x576x32xbf16> to vector<576x32xbf16>
    %cst = arith.constant dense<0.000000e+00> : vector<128x32xf32>
    %4 = tpu.matmul %1, %3, %cst {dimension_numbers = #tpu.dot_dimension_numbers<[1], [0], [0], [1], [0, 0, 1, 1], [], []>} : vector<128x576xbf16>, vector<576x32xbf16>, vector<128x32xf32> -> vector<128x32xf32>
    %c0_5 = arith.constant 0 : index
    %c0_6 = arith.constant 0 : index
    %c0_7 = arith.constant 0 : index
    %5 = vector.load %arg3[%c0_5, %c0_6, %c0_7] : memref<1x1x32xf32, #tpu.memory_space<vmem>>, vector<1x1x32xf32>
    %6 = vector.shape_cast %5 : vector<1x1x32xf32> to vector<1x32xf32>
    %7 = vector.broadcast %6 : vector<1x32xf32> to vector<128x32xf32>
    %8 = arith.mulf %4, %7 : vector<128x32xf32>
    %c0_8 = arith.constant 0 : index
    %c0_9 = arith.constant 0 : index
    %c0_10 = arith.constant 0 : index
    %9 = vector.load %arg4[%c0_8, %c0_9, %c0_10] : memref<1x1x32xf32, #tpu.memory_space<vmem>>, vector<1x1x32xf32>
    %10 = vector.shape_cast %9 : vector<1x1x32xf32> to vector<1x32xf32>
    %11 = vector.broadcast %10 : vector<1x32xf32> to vector<128x32xf32>
    %12 = arith.addf %8, %11 : vector<128x32xf32>
    %cst_11 = arith.constant 0.000000e+00 : f32
    %13 = vector.broadcast %cst_11 : f32 to vector<128x32xf32>
    %14 = arith.maximumf %12, %13 : vector<128x32xf32>
    %c0_i32 = arith.constant 0 : i32
    %15 = arith.cmpi eq, %arg0, %c0_i32 : i32
    %16 = arith.extui %15 : i1 to i32
    %c0_i32_12 = arith.constant 0 : i32
    %17 = arith.cmpi ne, %16, %c0_i32_12 : i32
    scf.if %17 {
      %c0_15 = arith.constant 0 : index
      %c0_16 = arith.constant 0 : index
      %c0_17 = arith.constant 0 : index
      %21 = vector.load %arg12[%c0_15, %c0_16, %c0_17] : memref<1x128x32xf32, #tpu.memory_space<vmem>>, vector<1x128x32xf32>
      %22 = vector.shape_cast %21 : vector<1x128x32xf32> to vector<128x32xf32>
      %23 = vector.shape_cast %14 : vector<128x32xf32> to vector<1x128x32xf32>
      tpu.vector_store %arg12[%c0_15, %c0_16, %c0_17], %23 {strides = array<i32>} : memref<1x128x32xf32, #tpu.memory_space<vmem>>, vector<1x128x32xf32>,
    } else {
    }
    %c0_i32_13 = arith.constant 0 : i32
    %18 = arith.cmpi sgt, %arg0, %c0_i32_13 : i32
    %19 = arith.extui %18 : i1 to i32
    %c0_i32_14 = arith.constant 0 : i32
    %20 = arith.cmpi ne, %19, %c0_i32_14 : i32
    scf.if %20 {
      %21 = vector.shape_cast %14 : vector<128x32xf32> to vector<2x8x8x32xf32>
      %cst_15 = arith.constant dense<0.000000e+00> : vector<2x8x32xf32>
      %22 = vector.multi_reduction <add>, %21, %cst_15 [2] : vector<2x8x8x32xf32> to vector<2x8x32xf32>
      %cst_16 = arith.constant 8.000000e+00 : f32
      %23 = vector.broadcast %cst_16 : f32 to vector<2x8x32xf32>
      %24 = arith.divf %22, %23 : vector<2x8x32xf32>
      %cst_17 = arith.constant dense<0.000000e+00> : vector<2x8x32xf32>
      %25 = vector.multi_reduction <add>, %21, %cst_17 [1] : vector<2x8x8x32xf32> to vector<2x8x32xf32>
      %cst_18 = arith.constant 8.000000e+00 : f32
      %26 = vector.broadcast %cst_18 : f32 to vector<2x8x32xf32>
      %27 = arith.divf %25, %26 : vector<2x8x32xf32>
      %28 = tpu.concatenate %24, %27 in 1 : vector<2x8x32xf32>, vector<2x8x32xf32> -> vector<2x16x32xf32>
      %29 = vector.shape_cast %28 : vector<2x16x32xf32> to vector<32x32xf32>
      %c0_19 = arith.constant 0 : index
      %c0_20 = arith.constant 0 : index
      %c0_21 = arith.constant 0 : index
      %30 = vector.load %arg5[%c0_19, %c0_20, %c0_21] : memref<1x32x8xf32, #tpu.memory_space<vmem>>, vector<1x32x8xf32>
      %31 = vector.shape_cast %30 : vector<1x32x8xf32> to vector<32x8xf32>
      %cst_22 = arith.constant dense<0.000000e+00> : vector<32x8xf32>
      %32 = tpu.matmul %29, %31, %cst_22 {dimension_numbers = #tpu.dot_dimension_numbers<[1], [0], [0], [1], [0, 0, 1, 1], [], []>} : vector<32x32xf32>, vector<32x8xf32>, vector<32x8xf32> -> vector<32x8xf32>
      %c0_23 = arith.constant 0 : index
      %c0_24 = arith.constant 0 : index
      %c0_25 = arith.constant 0 : index
      %33 = vector.load %arg6[%c0_23, %c0_24, %c0_25] : memref<1x1x8xf32, #tpu.memory_space<vmem>>, vector<1x1x8xf32>
      %34 = vector.shape_cast %33 : vector<1x1x8xf32> to vector<1x8xf32>
      %35 = vector.broadcast %34 : vector<1x8xf32> to vector<32x8xf32>
      %36 = arith.mulf %32, %35 : vector<32x8xf32>
      %c0_26 = arith.constant 0 : index
      %c0_27 = arith.constant 0 : index
      %c0_28 = arith.constant 0 : index
      %37 = vector.load %arg7[%c0_26, %c0_27, %c0_28] : memref<1x1x8xf32, #tpu.memory_space<vmem>>, vector<1x1x8xf32>
      %38 = vector.shape_cast %37 : vector<1x1x8xf32> to vector<1x8xf32>
      %39 = vector.broadcast %38 : vector<1x8xf32> to vector<32x8xf32>
      %40 = arith.addf %36, %39 : vector<32x8xf32>
      %cst_29 = arith.constant 3.000000e+00 : f32
      %41 = vector.broadcast %cst_29 : f32 to vector<32x8xf32>
      %42 = arith.addf %40, %41 : vector<32x8xf32>
      %cst_30 = arith.constant 0.000000e+00 : f32
      %cst_31 = arith.constant 6.000000e+00 : f32
      %43 = vector.broadcast %cst_30 : f32 to vector<32x8xf32>
      %44 = arith.maximumf %43, %42 : vector<32x8xf32>
      %45 = vector.broadcast %cst_31 : f32 to vector<32x8xf32>
      %46 = arith.minimumf %45, %44 : vector<32x8xf32>
      %47 = arith.mulf %40, %46 : vector<32x8xf32>
      %cst_32 = arith.constant 0.166666672 : f32
      %48 = vector.broadcast %cst_32 : f32 to vector<32x8xf32>
      %49 = arith.mulf %47, %48 : vector<32x8xf32>
      %50 = vector.shape_cast %49 : vector<32x8xf32> to vector<2x16x8xf32>
      %51 = vector.extract_strided_slice %50 {offsets = [0, 0, 0], sizes = [2, 8, 8], strides = [1, 1, 1]} : vector<2x16x8xf32> to vector<2x8x8xf32>
      %52 = vector.shape_cast %51 : vector<2x8x8xf32> to vector<16x8xf32>
      %53 = vector.extract_strided_slice %50 {offsets = [0, 8, 0], sizes = [2, 8, 8], strides = [1, 1, 1]} : vector<2x16x8xf32> to vector<2x8x8xf32>
      %54 = vector.shape_cast %53 : vector<2x8x8xf32> to vector<16x8xf32>
      %c0_33 = arith.constant 0 : index
      %c0_34 = arith.constant 0 : index
      %c0_35 = arith.constant 0 : index
      %55 = vector.load %arg8[%c0_33, %c0_34, %c0_35] : memref<1x8x32xf32, #tpu.memory_space<vmem>>, vector<1x8x32xf32>
      %56 = vector.shape_cast %55 : vector<1x8x32xf32> to vector<8x32xf32>
      %cst_36 = arith.constant dense<0.000000e+00> : vector<16x32xf32>
      %57 = tpu.matmul %52, %56, %cst_36 {dimension_numbers = #tpu.dot_dimension_numbers<[1], [0], [0], [1], [0, 0, 1, 1], [], []>} : vector<16x8xf32>, vector<8x32xf32>, vector<16x32xf32> -> vector<16x32xf32>
      %c0_37 = arith.constant 0 : index
      %c0_38 = arith.constant 0 : index
      %c0_39 = arith.constant 0 : index
      %58 = vector.load %arg9[%c0_37, %c0_38, %c0_39] : memref<1x1x32xf32, #tpu.memory_space<vmem>>, vector<1x1x32xf32>
      %59 = vector.shape_cast %58 : vector<1x1x32xf32> to vector<1x32xf32>
      %60 = vector.broadcast %59 : vector<1x32xf32> to vector<16x32xf32>
      %61 = arith.addf %57, %60 : vector<16x32xf32>
      %62 = arith.negf %61 : vector<16x32xf32>
      %63 = math.exp %62 : vector<16x32xf32>
      %cst_40 = arith.constant 1.000000e+00 : f32
      %64 = vector.broadcast %cst_40 : f32 to vector<16x32xf32>
      %65 = arith.addf %64, %63 : vector<16x32xf32>
      %66 = arith.divf %64, %65 : vector<16x32xf32>
      %c0_41 = arith.constant 0 : index
      %c0_42 = arith.constant 0 : index
      %c0_43 = arith.constant 0 : index
      %67 = vector.load %arg10[%c0_41, %c0_42, %c0_43] : memref<1x8x32xf32, #tpu.memory_space<vmem>>, vector<1x8x32xf32>
      %68 = vector.shape_cast %67 : vector<1x8x32xf32> to vector<8x32xf32>
      %cst_44 = arith.constant dense<0.000000e+00> : vector<16x32xf32>
      %69 = tpu.matmul %54, %68, %cst_44 {dimension_numbers = #tpu.dot_dimension_numbers<[1], [0], [0], [1], [0, 0, 1, 1], [], []>} : vector<16x8xf32>, vector<8x32xf32>, vector<16x32xf32> -> vector<16x32xf32>
      %c0_45 = arith.constant 0 : index
      %c0_46 = arith.constant 0 : index
      %c0_47 = arith.constant 0 : index
      %70 = vector.load %arg11[%c0_45, %c0_46, %c0_47] : memref<1x1x32xf32, #tpu.memory_space<vmem>>, vector<1x1x32xf32>
      %71 = vector.shape_cast %70 : vector<1x1x32xf32> to vector<1x32xf32>
      %72 = vector.broadcast %71 : vector<1x32xf32> to vector<16x32xf32>
      %73 = arith.addf %69, %72 : vector<16x32xf32>
      %74 = arith.negf %73 : vector<16x32xf32>
      %75 = math.exp %74 : vector<16x32xf32>
      %cst_48 = arith.constant 1.000000e+00 : f32
      %76 = vector.broadcast %cst_48 : f32 to vector<16x32xf32>
      %77 = arith.addf %76, %75 : vector<16x32xf32>
      %78 = arith.divf %76, %77 : vector<16x32xf32>
      %79 = vector.shape_cast %66 : vector<16x32xf32> to vector<2x8x1x32xf32>
      %80 = vector.broadcast %79 : vector<2x8x1x32xf32> to vector<2x8x8x32xf32>
      %81 = arith.mulf %21, %80 : vector<2x8x8x32xf32>
      %82 = vector.shape_cast %78 : vector<16x32xf32> to vector<2x1x8x32xf32>
      %83 = vector.broadcast %82 : vector<2x1x8x32xf32> to vector<2x8x8x32xf32>
      %84 = arith.mulf %81, %83 : vector<2x8x8x32xf32>
      %85 = vector.shape_cast %84 : vector<2x8x8x32xf32> to vector<128x32xf32>
      %c0_49 = arith.constant 0 : index
      %c0_50 = arith.constant 0 : index
      %c0_51 = arith.constant 0 : index
      %86 = vector.load %arg12[%c0_49, %c0_50, %c0_51] : memref<1x128x32xf32, #tpu.memory_space<vmem>>, vector<1x128x32xf32>
      %87 = vector.shape_cast %86 : vector<1x128x32xf32> to vector<128x32xf32>
      %88 = vector.shape_cast %85 : vector<128x32xf32> to vector<1x128x32xf32>
      tpu.vector_store %arg12[%c0_49, %c0_50, %c0_51], %88 {strides = array<i32>} : memref<1x128x32xf32, #tpu.memory_space<vmem>>, vector<1x128x32xf32>,
    } else {
    }
    return
  }
  func.func @transform_0(%arg0: i32) -> (i32, i32, i32) {
    %c1_i32 = arith.constant 1 : i32
    %0 = arith.subi %arg0, %c1_i32 : i32
    %c0_i32 = arith.constant 0 : i32
    %1 = arith.maxsi %0, %c0_i32 : i32
    %c0_i32_0 = arith.constant 0 : i32
    %c0_i32_1 = arith.constant 0 : i32
    %c0_i32_2 = arith.constant 0 : i32
    return %1, %c0_i32_0, %c0_i32_1 : i32, i32, i32
  }
  func.func @transform_1(%arg0: i32) -> (i32, i32, i32) {
    %c0_i32 = arith.constant 0 : i32
    %c0_i32_0 = arith.constant 0 : i32
    %c0_i32_1 = arith.constant 0 : i32
    return %arg0, %c0_i32, %c0_i32_0 : i32, i32, i32
  }
  func.func @transform_2(%arg0: i32) -> (i32, i32, i32) {
    %c0_i32 = arith.constant 0 : i32
    %c0_i32_0 = arith.constant 0 : i32
    %c0_i32_1 = arith.constant 0 : i32
    return %arg0, %c0_i32, %c0_i32_0 : i32, i32, i32
  }
  func.func @transform_3(%arg0: i32) -> (i32, i32, i32) {
    %c0_i32 = arith.constant 0 : i32
    %c0_i32_0 = arith.constant 0 : i32
    %c0_i32_1 = arith.constant 0 : i32
    return %arg0, %c0_i32, %c0_i32_0 : i32, i32, i32
  }
  func.func @transform_4(%arg0: i32) -> (i32, i32, i32) {
    %c0_i32 = arith.constant 0 : i32
    %c0_i32_0 = arith.constant 0 : i32
    %c0_i32_1 = arith.constant 0 : i32
    return %arg0, %c0_i32, %c0_i32_0 : i32, i32, i32
  }
  func.func @transform_5(%arg0: i32) -> (i32, i32, i32) {
    %c0_i32 = arith.constant 0 : i32
    %c0_i32_0 = arith.constant 0 : i32
    %c0_i32_1 = arith.constant 0 : i32
    return %arg0, %c0_i32, %c0_i32_0 : i32, i32, i32
  }
  func.func @transform_6(%arg0: i32) -> (i32, i32, i32) {
    %c0_i32 = arith.constant 0 : i32
    %c0_i32_0 = arith.constant 0 : i32
    %c0_i32_1 = arith.constant 0 : i32
    return %arg0, %c0_i32, %c0_i32_0 : i32, i32, i32
  }
  func.func @transform_7(%arg0: i32) -> (i32, i32, i32) {
    %c0_i32 = arith.constant 0 : i32
    %c0_i32_0 = arith.constant 0 : i32
    %c0_i32_1 = arith.constant 0 : i32
    return %arg0, %c0_i32, %c0_i32_0 : i32, i32, i32
  }
  func.func @transform_8(%arg0: i32) -> (i32, i32, i32) {
    %c0_i32 = arith.constant 0 : i32
    %c0_i32_0 = arith.constant 0 : i32
    %c0_i32_1 = arith.constant 0 : i32
    return %arg0, %c0_i32, %c0_i32_0 : i32, i32, i32
  }
  func.func @transform_9(%arg0: i32) -> (i32, i32, i32) {
    %c0_i32 = arith.constant 0 : i32
    %c0_i32_0 = arith.constant 0 : i32
    %c0_i32_1 = arith.constant 0 : i32
    return %arg0, %c0_i32, %c0_i32_0 : i32, i32, i32
  }
  func.func @transform_10(%arg0: i32) -> (i32, i32, i32) {
    %c0_i32 = arith.constant 0 : i32
    %c0_i32_0 = arith.constant 0 : i32
    %c0_i32_1 = arith.constant 0 : i32
    return %arg0, %c0_i32, %c0_i32_0 : i32, i32, i32
  }
  func.func @transform_11(%arg0: i32) -> (i32, i32, i32) {
    %c0_i32 = arith.constant 0 : i32
    %c0_i32_0 = arith.constant 0 : i32
    %c0_i32_1 = arith.constant 0 : i32
    return %arg0, %c0_i32, %c0_i32_0 : i32, i32, i32
  }
}

module attributes {stable_mosaic.version = 11 : i64} {
  func.func @_fuse_tail_kernel(%arg0: memref<32x512xbf16, #tpu.memory_space<vmem>>, %arg1: memref<512x64xbf16, #tpu.memory_space<vmem>>, %arg2: memref<1x64xf32, #tpu.memory_space<vmem>>, %arg3: memref<1x64xf32, #tpu.memory_space<vmem>>, %arg4: memref<64x64xf32, #tpu.memory_space<vmem>>, %arg5: memref<1x64xf32, #tpu.memory_space<vmem>>, %arg6: memref<64x6xf32, #tpu.memory_space<vmem>>, %arg7: memref<1x6xf32, #tpu.memory_space<vmem>>, %arg8: memref<2x6xf32, #tpu.memory_space<vmem>>) attributes {dimension_semantics = [], scalar_prefetch = 0 : i64, scratch_operands = 0 : i64, tpu.core_type = #tpu.core_type<tc>} {
    %c0 = arith.constant 0 : index
    %c0_0 = arith.constant 0 : index
    %0 = vector.load %arg0[%c0, %c0_0] : memref<32x512xbf16, #tpu.memory_space<vmem>>, vector<32x512xbf16>
    %c0_1 = arith.constant 0 : index
    %c0_2 = arith.constant 0 : index
    %1 = vector.load %arg1[%c0_1, %c0_2] : memref<512x64xbf16, #tpu.memory_space<vmem>>, vector<512x64xbf16>
    %cst = arith.constant dense<0.000000e+00> : vector<32x64xf32>
    %2 = tpu.matmul %0, %1, %cst {dimension_numbers = #tpu.dot_dimension_numbers<[1], [0], [0], [1], [0, 0, 1, 1], [], []>} : vector<32x512xbf16>, vector<512x64xbf16>, vector<32x64xf32> -> vector<32x64xf32>
    %c0_3 = arith.constant 0 : index
    %c0_4 = arith.constant 0 : index
    %3 = vector.load %arg2[%c0_3, %c0_4] : memref<1x64xf32, #tpu.memory_space<vmem>>, vector<1x64xf32>
    %4 = vector.broadcast %3 : vector<1x64xf32> to vector<32x64xf32>
    %5 = arith.mulf %2, %4 : vector<32x64xf32>
    %c0_5 = arith.constant 0 : index
    %c0_6 = arith.constant 0 : index
    %6 = vector.load %arg3[%c0_5, %c0_6] : memref<1x64xf32, #tpu.memory_space<vmem>>, vector<1x64xf32>
    %7 = vector.broadcast %6 : vector<1x64xf32> to vector<32x64xf32>
    %8 = arith.addf %5, %7 : vector<32x64xf32>
    %cst_7 = arith.constant 0.000000e+00 : f32
    %9 = vector.broadcast %cst_7 : f32 to vector<32x64xf32>
    %10 = arith.maximumf %8, %9 : vector<32x64xf32>
    %11 = vector.shape_cast %10 : vector<32x64xf32> to vector<2x16x64xf32>
    %cst_8 = arith.constant dense<0.000000e+00> : vector<2x64xf32>
    %12 = vector.multi_reduction <add>, %11, %cst_8 [1] : vector<2x16x64xf32> to vector<2x64xf32>
    %cst_9 = arith.constant 1.600000e+01 : f32
    %13 = vector.broadcast %cst_9 : f32 to vector<2x64xf32>
    %14 = arith.divf %12, %13 : vector<2x64xf32>
    %c0_10 = arith.constant 0 : index
    %c0_11 = arith.constant 0 : index
    %15 = vector.load %arg4[%c0_10, %c0_11] : memref<64x64xf32, #tpu.memory_space<vmem>>, vector<64x64xf32>
    %cst_12 = arith.constant dense<0.000000e+00> : vector<2x64xf32>
    %16 = tpu.matmul %14, %15, %cst_12 {dimension_numbers = #tpu.dot_dimension_numbers<[1], [0], [0], [1], [0, 0, 1, 1], [], []>} : vector<2x64xf32>, vector<64x64xf32>, vector<2x64xf32> -> vector<2x64xf32>
    %c0_13 = arith.constant 0 : index
    %c0_14 = arith.constant 0 : index
    %17 = vector.load %arg5[%c0_13, %c0_14] : memref<1x64xf32, #tpu.memory_space<vmem>>, vector<1x64xf32>
    %18 = vector.broadcast %17 : vector<1x64xf32> to vector<2x64xf32>
    %19 = arith.addf %16, %18 : vector<2x64xf32>
    %c0_15 = arith.constant 0 : index
    %c0_16 = arith.constant 0 : index
    %20 = vector.load %arg6[%c0_15, %c0_16] : memref<64x6xf32, #tpu.memory_space<vmem>>, vector<64x6xf32>
    %cst_17 = arith.constant dense<0.000000e+00> : vector<2x6xf32>
    %21 = tpu.matmul %19, %20, %cst_17 {dimension_numbers = #tpu.dot_dimension_numbers<[1], [0], [0], [1], [0, 0, 1, 1], [], []>} : vector<2x64xf32>, vector<64x6xf32>, vector<2x6xf32> -> vector<2x6xf32>
    %c0_18 = arith.constant 0 : index
    %c0_19 = arith.constant 0 : index
    %22 = vector.load %arg7[%c0_18, %c0_19] : memref<1x6xf32, #tpu.memory_space<vmem>>, vector<1x6xf32>
    %23 = vector.broadcast %22 : vector<1x6xf32> to vector<2x6xf32>
    %24 = arith.addf %21, %23 : vector<2x6xf32>
    %c0_20 = arith.constant 0 : index
    %c0_21 = arith.constant 0 : index
    %25 = vector.load %arg8[%c0_20, %c0_21] : memref<2x6xf32, #tpu.memory_space<vmem>>, vector<2x6xf32>
    tpu.vector_store %arg8[%c0_20, %c0_21], %24 {strides = array<i32>} : memref<2x6xf32, #tpu.memory_space<vmem>>, vector<2x6xf32>,
    return
  }
}

</mosaic_0001>

<bundles_post_ra>
// kernel: caloc_resnet50_forward.3
= control target key start
LH: loop header
LB: loop body
LE: loop exit
PB: predicated region body
PF: predicated region fallthrough
CT: control target
= control target key end

     0   :  { %s548_s15 = smov 0   ;;  %s599_s0 = inlined_call_operand.vmem [shape: bf16[128,64], index: 0, kind: input, shape index: {}]   ;;  %s600_s1 = inlined_call_operand.vmem [shape: bf16[64,64], index: 1, kind: input, shape index: {}]   ;;  %s601_s2 = inlined_call_operand.vmem [shape: f32[1,64], index: 2, kind: input, shape index: {}]   ;;  %s602_s3 = inlined_call_operand.vmem [shape: f32[1,64], index: 3, kind: input, shape index: {}]   ;;  %s603_s4 = inlined_call_operand.vmem [shape: f32[128,64], index: 4, kind: output, shape index: {}]  }
   0x1 LB: > { %s442_s16 = sadd.s32 4294967295, %s521_s15   ;;  %p446_p0 = scmp.ge.s32.totalorder %s521_s15, 1  ;;  %s521_s15 = sphi %s548_s15, %s14_s15  }
   0x2   : > { %p163_p1 = scmp.lt.s32.totalorder %s521_s15, 3 }
   0x4   : > { %p164_p2 = pnand %p446_p0, %p163_p1 }
   0x5   : > { %s447_s19 = sshll.u32 (!%p164_p2), %s442_s16, 3 }
   0x6   : > { %167 = sbr.rel (%p164_p2) target bundleno = 234 (0xea), region = 36  ;;  %p190_p3 = scmp.lt.s32.totalorder (!%p164_p2), %s447_s19, 15 }
   0xb   : > { %v507_v0 = vld [vmem:[%s600_s1 + $0x18] sm:$0xff]   ;;  %v508_v1 = vld [vmem:[%s600_s1 + $0x10] sm:$0xff]   ;;  %s605_s19 = smov (!%p190_p3, %s447_s19), 15  ;;  %v509_v2 = vld [vmem:[%s600_s1 + $0x8] sm:$0xff]   ;;  %vm262_vm0 = vcmask 523264  }
   0xc   : > { %475 = vmatprep.subr.bf16.mxu0 %v507_v0  ;;  %491 = vmatprep.subr.bf16.mxu1 %v507_v0  ;;  %s448_s24 = sshll.u32 %s605_s19, 2  ;;  %v510_v3 = vld [vmem:[%s600_s1] sm:$0xff]   ;;  %s450_s8 = sshll.u32 %s605_s19, 3 }
   0xd   : > { %476 = vmatpush3.bf16.msra.mxu0 %v507_v0  ;;  %495 = vmatpush3.bf16.msra.mxu1 %v507_v0  ;;  %s193_s29 = scalar_lea.vmem %s599_s0, %s448_s24  ;;  %v463_v8 = vld [vmem:[%s601_s2] ss:$0 sm:$0xff]  ;;  %s199_s11 = scalar_lea.vmem %s603_s4, %s450_s8 }
   0xe   : > { %477 = vmatprep.subr.bf16.mxu0 %v508_v1  ;;  %492 = vmatprep.subr.bf16.mxu1 %v508_v1  ;;  %v511_v4 = vld [vmem:[%s193_s29] sm:$0xff]   ;;  %v512_v5 = vld [vmem:[%s193_s29 + $0x10] sm:$0xff]   ;;  %v513_v6 = vld [vmem:[%s193_s29 + $0x8] sm:$0xff]  }
   0xf   : > { %483 = vmatprep.mubr.msk.bf16.mxu0 %vm262_vm0, %v511_v4  ;;  %487 = vmatprep.mubr.msk.bf16.mxu1 %vm262_vm0, %v512_v5  ;;  %v514_v7 = vld [vmem:[%s193_s29 + $0x18] sm:$0xff]   ;;  %v464_v10 = vld [vmem:[%s602_s3] ss:$0 sm:$0xff] }
  0x11   : > { %478 = vmatpush3.bf16.msra.mxu0 %v508_v1  ;;  %496 = vmatpush3.bf16.msra.mxu1 %v508_v1 }
  0x12   : > { %479 = vmatprep.subr.bf16.mxu0 %v509_v2  ;;  %493 = vmatprep.subr.bf16.mxu1 %v509_v2 }
  0x15   : > { %480 = vmatpush3.bf16.msra.mxu0 %v509_v2  ;;  %497 = vmatpush3.bf16.msra.mxu1 %v509_v2 }
  0x16   : > { %481 = vmatprep.subr.bf16.mxu0 %v510_v3  ;;  %494 = vmatprep.subr.bf16.mxu1 %v510_v3 }
  0x19   : > { %482 = vmatpush3.bf16.msra.mxu0 %v510_v3  ;;  %498 = vmatpush3.bf16.msra.mxu1 %v510_v3 }
  0x1c   : > { %484 = vmatmul.mubr.msk.bf16.vlgmr.msra.gmra.mxu0 %vm262_vm0, %v513_v6  ;;  %488 = vmatmul.mubr.msk.bf16.vlgmr.msra.gmra.mxu1 %vm262_vm0, %v514_v7 }
  0xdc   : > { %v485_v9 = vpop.f32.mrf.mxu0  ;;  %v489_v11 = vpop.f32.mrf.mxu1 }
  0xdd   : > { %v349_v12 = vmul.f32 %v485_v9, %v463_v8  ;;  %v353_v13 = vmul.f32 %v489_v11, %v463_v8 }
  0xde   : > { %v309_v14 = vpop.f32.mrf.mxu0  ;;  %v325_v15 = vpop.f32.mrf.mxu1 }
  0xdf   : > { %v364_v16 = vadd.f32 %v464_v10, %v349_v12  ;;  %v368_v17 = vadd.f32 %v464_v10, %v353_v13  ;;  %v347_v18 = vmul.f32 %v463_v8, %v309_v14  ;;  %v351_v19 = vmul.f32 %v463_v8, %v325_v15 }
  0xe0   : > { %v486_v20 = vpop.f32.mrf.mxu0  ;;  %v490_v21 = vpop.f32.mrf.mxu1 }
  0xe1   : > { %v372_v22 = vmax.f32 %v364_v16, 0.0  ;;  %v376_v23 = vmax.f32 %v368_v17, 0.0  ;;  %v362_v24 = vadd.f32 %v464_v10, %v347_v18  ;;  %v366_v25 = vadd.f32 %v464_v10, %v351_v19 }
  0xe2   : > { %v350_v26 = vmul.f32 %v486_v20, %v463_v8  ;;  %v354_v27 = vmul.f32 %v490_v21, %v463_v8  ;;  %v312_v28 = vpop.f32.mrf.mxu0  ;;  %v328_v29 = vpop.f32.mrf.mxu1 }
  0xe3   : > { %380 = vst.msk [vmem:[%s199_s11 + $0x10] sm:$0xff] %vm262_vm0, %v372_v22  ;;  %384 = vst.msk [vmem:[%s199_s11 + $0x30] sm:$0xff] %vm262_vm0, %v376_v23  ;;  %v370_v30 = vmax.f32 %v362_v24, 0.0  ;;  %v374_v31 = vmax.f32 %v366_v25, 0.0  ;;  %v348_v32 = vmul.f32 %v463_v8, %v312_v28  ;;  %v352_v33 = vmul.f32 %v463_v8, %v328_v29 }
  0xe4   : > { %v365_v34 = vadd.f32 %v464_v10, %v350_v26  ;;  %v369_v35 = vadd.f32 %v464_v10, %v354_v27 }
  0xe5   : > { %378 = vst.msk [vmem:[%s199_s11] sm:$0xff] %vm262_vm0, %v370_v30  ;;  %382 = vst.msk [vmem:[%s199_s11 + $0x20] sm:$0xff] %vm262_vm0, %v374_v31  ;;  %v363_v36 = vadd.f32 %v464_v10, %v348_v32  ;;  %v367_v37 = vadd.f32 %v464_v10, %v352_v33 }
  0xe6   : > { %v373_v38 = vmax.f32 %v365_v34, 0.0  ;;  %v377_v39 = vmax.f32 %v369_v35, 0.0 }
  0xe7   : > { %v371_v40 = vmax.f32 %v363_v36, 0.0  ;;  %v375_v41 = vmax.f32 %v367_v37, 0.0 }
  0xe8   : > { %381 = vst.msk [vmem:[%s199_s11 + $0x18] sm:$0xff] %vm262_vm0, %v373_v38  ;;  %385 = vst.msk [vmem:[%s199_s11 + $0x38] sm:$0xff] %vm262_vm0, %v377_v39 }
  0xe9   : > { %379 = vst.msk [vmem:[%s199_s11 + $0x8] sm:$0xff] %vm262_vm0, %v371_v40  ;;  %383 = vst.msk [vmem:[%s199_s11 + $0x28] sm:$0xff] %vm262_vm0, %v375_v41 }
  0xea PF: > { %s14_s15 = sadd.s32 1, %s521_s15  }
  0xeb   : > { %p11_p4 = scmp.ge.s32.totalorder %s14_s15, 4  }
  0xed   :  { %13 = sbr.rel (!%p11_p4) target bundleno = 1 (0x1), region = 66 }

// kernel: caloc_resnet50_forward.4
= control target key start
LH: loop header
LB: loop body
LE: loop exit
PB: predicated region body
PF: predicated region fallthrough
CT: control target
= control target key end

     0   :  { %s2947_s17 = smov 0   ;;  %s3433_s0 = inlined_call_operand.vmem [shape: bf16[3,128,576], index: 0, kind: input, shape index: {}]   ;;  %s3434_s1 = inlined_call_operand.vmem [shape: bf16[4,576,32], index: 1, kind: input, shape index: {}]   ;;  %s3435_s2 = inlined_call_operand.vmem [shape: f32[4,1,32], index: 2, kind: input, shape index: {}]   ;;  %s3436_s3 = inlined_call_operand.vmem [shape: f32[4,1,32], index: 3, kind: input, shape index: {}]   ;;  %s3437_s4 = inlined_call_operand.vmem [shape: f32[4,32,8], index: 4, kind: input, shape index: {}]   ;;  %s3438_s5 = inlined_call_operand.vmem [shape: f32[4,1,8], index: 5, kind: input, shape index: {}]   ;;  %s3439_s6 = inlined_call_operand.vmem [shape: f32[4,1,8], index: 6, kind: input, shape index: {}]   ;;  %s3440_s7 = inlined_call_operand.vmem [shape: f32[4,8,32], index: 7, kind: input, shape index: {}]   ;;  %s3441_s8 = inlined_call_operand.vmem [shape: f32[4,1,32], index: 8, kind: input, shape index: {}]   ;;  %s3442_s9 = inlined_call_operand.vmem [shape: f32[4,8,32], index: 9, kind: input, shape index: {}]   ;;  %s3443_s10 = inlined_call_operand.vmem [shape: f32[4,1,32], index: 10, kind: input, shape index: {}]   ;;  %s3444_s11 = inlined_call_operand.vmem [shape: f32[4,128,32], index: 11, kind: output, shape index: {}]  }
   0x1 LB: > { %s2953_s18 = sadd.s32 4294967295, %s2884_s17   ;;  %p2424_p0 = scmp.ge.s32.totalorder %s2884_s17, 1  ;;  %s2884_s17 = sphi %s2947_s17, %s21_s17  }
   0x2   : > { %p435_p1 = scmp.lt.s32.totalorder %s2884_s17, 5 }
   0x4   : > { %p436_p2 = pnand %p2424_p0, %p435_p1 }
   0x6   : > { %439 = sbr.rel (%p436_p2) target bundleno = 859 (0x35b), region = 64 }
   0xb   : > { %p525_p3 = scmp.lt.s32.totalorder %s2953_s18, 3  ;;  %vm1103_vm0 = vcmask 523264   ;;  %p2525_p6 = scmp.ne.s32.totalorder %s2953_s18, 0 }
   0xd   : > { %s2959_s19 = scalar_select %p525_p3, %s2953_s18, 3 }
   0xf   : > { %s2760_s20 = smul.u32 288, %s2959_s19  ;;  %s2547_s21 = sshll.u32 %s2959_s19, 5 }
  0x10   : > { %s2966_s24 = scalar_lea.vmem %s3437_s4, %s2547_s21  ;;  %s543_s27 = scalar_lea.vmem %s3438_s5, %s2959_s19 }
  0x11   : > { %s2975_s30 = scalar_lea.vmem %s3434_s1, %s2760_s20  ;;  %s546_s14 = scalar_lea.vmem %s3439_s6, %s2959_s19 }
  0x12   : > { %s2435_s15 = sshll.u32 %s2959_s19, 3  ;;  %v2770_v0 = vld [vmem:[%s2975_s30 + $0x78] sm:$0xff]   ;;  %s560_s16 = scalar_lea.vmem %s3443_s10, %s2959_s19  ;;  %v2774_v4 = vld [vmem:[%s2975_s30 + $0x70] sm:$0xff]   ;;  %v2778_v8 = vld [vmem:[%s2975_s30 + $0x68] sm:$0xff]  }
  0x13   : > { %s2990_s20 = scalar_lea.vmem %s3440_s7, %s2435_s15  ;;  %s2995_s29 = scalar_lea.vmem %s3442_s9, %s2435_s15  ;;  %v2771_v1 = vld [vmem:[%s2975_s30 + $0xf8] sm:$0xff]   ;;  %2549 = vmatprep.subr.bf16.mxu0 %v2770_v0  ;;  %v2775_v5 = vld [vmem:[%s2975_s30 + $0xf0] sm:$0xff]   ;;  %v2779_v9 = vld [vmem:[%s2975_s30 + $0xe8] sm:$0xff]  }
  0x14   : > { %s2548_s21 = sshll.u32 %s2959_s19, 7  ;;  %v2772_v2 = vld [vmem:[%s2975_s30 + $0x38] sm:$0xff]   ;;  %2613 = vmatprep.subr.bf16.mxu1 %v2771_v1  ;;  %v2776_v6 = vld [vmem:[%s2975_s30 + $0x30] sm:$0xff]   ;;  %v2780_v10 = vld [vmem:[%s2975_s30 + $0x28] sm:$0xff]   ;;  %s2425_s15 = sadd.s32 4294967295, %s2953_s18 }
  0x15   : > { %s3007_s22 = scalar_lea.vmem %s3444_s11, %s2548_s21  ;;  %v2773_v3 = vld [vmem:[%s2975_s30 + $0xb8] sm:$0xff]   ;;  %2550 = vmatpush3.bf16.msra.mxu0 %v2772_v2  ;;  %v2777_v7 = vld [vmem:[%s2975_s30 + $0xb0] sm:$0xff]   ;;  %v2781_v11 = vld [vmem:[%s2975_s30 + $0xa8] sm:$0xff]   ;;  %p515_p4 = scmp.gt.s32.totalorder %s2425_s15, 0 }
  0x16   : > { %2614 = vmatpush3.bf16.msra.mxu1 %v2773_v3  ;;  %2551 = vmatprep.subr.bf16.mxu0 %v2774_v4  ;;  %v2782_v12 = vld [vmem:[%s2975_s30 + $0x60] sm:$0xff]   ;;  %v2786_v16 = vld [vmem:[%s2975_s30 + $0x58] sm:$0xff]   ;;  %p2426_p5 = scmp.lt.s32.totalorder %s2425_s15, 2  ;;  %v2790_v20 = vld [vmem:[%s2975_s30 + $0x50] sm:$0xff]   ;;  %s532_s23 = scalar_lea.vmem %s3435_s2, %s2959_s19 }
  0x17   : > { %2615 = vmatprep.subr.bf16.mxu1 %v2775_v5  ;;  %v2783_v13 = vld [vmem:[%s2975_s30 + $0xe0] sm:$0xff]   ;;  %v2787_v17 = vld [vmem:[%s2975_s30 + $0xd8] sm:$0xff]   ;;  %s3449_s15 = smov (!%p515_p4, %s2425_s15), 0  ;;  %v2791_v21 = vld [vmem:[%s2975_s30 + $0xd0] sm:$0xff]  }
  0x18   : > { %v2784_v14 = vld [vmem:[%s2975_s30 + $0x20] sm:$0xff]   ;;  %v2788_v18 = vld [vmem:[%s2975_s30 + $0x18] sm:$0xff]   ;;  %s3451_s15 = smov (!%p2426_p5, %s3449_s15), 2  ;;  %v2792_v22 = vld [vmem:[%s2975_s30 + $0x10] sm:$0xff]  }
  0x19   : > { %2552 = vmatpush3.bf16.msra.mxu0 %v2776_v6  ;;  %v2785_v15 = vld [vmem:[%s2975_s30 + $0xa0] sm:$0xff]   ;;  %v2789_v19 = vld [vmem:[%s2975_s30 + $0x98] sm:$0xff]   ;;  %v2793_v23 = vld [vmem:[%s2975_s30 + $0x90] sm:$0xff]   ;;  %s2759_s26 = smul.u32 320, %s3451_s15 }
  0x1a   : > { %2616 = vmatpush3.bf16.msra.mxu1 %v2777_v7  ;;  %2553 = vmatprep.subr.bf16.mxu0 %v2778_v8  ;;  %v2794_v24 = vld [vmem:[%s2975_s30 + $0x48] sm:$0xff]   ;;  %v2798_v28 = vld [vmem:[%s2975_s30 + $0x40] sm:$0xff]   ;;  %v2808_v36 = vld [vmem:[%s2975_s30 + $0x118] sm:$0xff]  }
  0x1b   : > { %2617 = vmatprep.subr.bf16.mxu1 %v2779_v9  ;;  %v2795_v25 = vld [vmem:[%s2975_s30 + $0xc8] sm:$0xff]   ;;  %v2799_v29 = vld [vmem:[%s2975_s30 + $0xc0] sm:$0xff]   ;;  %s3040_s13 = scalar_lea.vmem %s3433_s0, %s2759_s26  ;;  %v2821_v42 = vld [vmem:[%s2975_s30 + $0x110] sm:$0xff]   ;;  %s535_s26 = scalar_lea.vmem %s3436_s3, %s2959_s19 }
  0x1c   : > { %v2796_v26 = vld [vmem:[%s2975_s30 + $0x8] sm:$0xff]   ;;  %v2800_v30 = vld [vmem:[%s2975_s30] sm:$0xff]   ;;  %v2817_v43 = vld [vmem:[%s3040_s13 + $0x5c] ss:$20 sps:$4 sm:$0xff]  }
  0x1d   : > { %2554 = vmatpush3.bf16.msra.mxu0 %v2780_v10  ;;  %v2797_v27 = vld [vmem:[%s2975_s30 + $0x88] sm:$0xff]   ;;  %v2801_v31 = vld [vmem:[%s2975_s30 + $0x80] sm:$0xff]   ;;  %v2822_v47 = vld [vmem:[%s3040_s13 + $0x7c] ss:$20 sps:$4 sm:$0xff]  }
  0x1e   : > { %2618 = vmatpush3.bf16.msra.mxu1 %v2781_v11  ;;  %2555 = vmatprep.subr.bf16.mxu0 %v2782_v12  ;;  %v2802_v32 = vld [vmem:[%s3040_s13] ss:$20 sps:$4 sm:$0xff]   ;;  %v2804_v33 = vld [vmem:[%s3040_s13 + $0x4] ss:$20 sps:$4 sm:$0xff]   ;;  %v2805_v34 = vld [vmem:[%s3040_s13 + $0x8] ss:$20 sps:$4 sm:$0xff]  }
  0x1f   : > { %2619 = vmatprep.subr.bf16.mxu1 %v2783_v13  ;;  %v2807_v35 = vld [vmem:[%s3040_s13 + $0xc] ss:$20 sps:$4 sm:$0xff]   ;;  %1160 = vmatprep.mubr.bf16.mxu0 %v2804_v33  ;;  %v2811_v38 = vld [vmem:[%s3040_s13 + $0x34] ss:$20 sps:$4 sm:$0xff]   ;;  %v2814_v40 = vld [vmem:[%s3040_s13 + $0x30] ss:$20 sps:$4 sm:$0xff]  }
  0x20   : > { %1257 = vmatprep.mubr.bf16.mxu1 %v2807_v35  ;;  %v2809_v37 = vld [vmem:[%s3040_s13 + $0x2c] ss:$20 sps:$4 sm:$0xff]   ;;  %v2813_v39 = vld [vmem:[%s3040_s13 + $0x28] ss:$20 sps:$4 sm:$0xff]   ;;  %v2819_v44 = vld [vmem:[%s3040_s13 + $0x50] ss:$20 sps:$4 sm:$0xff]  }
  0x21   : > { %2556 = vmatpush3.bf16.msra.mxu0 %v2784_v14  ;;  %v2815_v41 = vld [vmem:[%s3040_s13 + $0x54] ss:$20 sps:$4 sm:$0xff]   ;;  %v2820_v45 = vld [vmem:[%s3040_s13 + $0x58] ss:$20 sps:$4 sm:$0xff]   ;;  %v2847_v49 = vld [vmem:[%s2975_s30 + $0x100] sm:$0xff]  }
  0x22   : > { %2620 = vmatpush3.bf16.msra.mxu1 %v2785_v15  ;;  %2557 = vmatprep.subr.bf16.mxu0 %v2786_v16  ;;  %v2834_v46 = vld [vmem:[%s2975_s30 + $0x108] sm:$0xff]   ;;  %v2824_v48 = vld [vmem:[%s3040_s13 + $0x84] ss:$20 sps:$4 sm:$0xff]   ;;  %v2827_v51 = vld [vmem:[%s3040_s13 + $0x80] ss:$20 sps:$4 sm:$0xff]  }
  0x23   : > { %2621 = vmatprep.subr.bf16.mxu1 %v2787_v17  ;;  %v2826_v50 = vld [vmem:[%s3040_s13 + $0x78] ss:$20 sps:$4 sm:$0xff]   ;;  %v2832_v54 = vld [vmem:[%s3040_s13 + $0xa0] ss:$20 sps:$4 sm:$0xff]   ;;  %v2833_v55 = vld [vmem:[%s3040_s13 + $0xa8] ss:$20 sps:$4 sm:$0xff]  }
  0x24   : > { %v2828_v52 = vld [vmem:[%s3040_s13 + $0xa4] ss:$20 sps:$4 sm:$0xff]   ;;  %v2830_v53 = vld [vmem:[%s3040_s13 + $0xac] ss:$20 sps:$4 sm:$0xff]   ;;  %v2837_v57 = vld [vmem:[%s3040_s13 + $0xd4] ss:$20 sps:$4 sm:$0xff]  }
  0x25   : > { %2558 = vmatpush3.bf16.msra.mxu0 %v2788_v18  ;;  %v2835_v56 = vld [vmem:[%s3040_s13 + $0xcc] ss:$20 sps:$4 sm:$0xff]   ;;  %v2839_v58 = vld [vmem:[%s3040_s13 + $0xc8] ss:$20 sps:$4 sm:$0xff]   ;;  %v2840_v59 = vld [vmem:[%s3040_s13 + $0xd0] ss:$20 sps:$4 sm:$0xff]  }
  0x26   : > { %2622 = vmatpush3.bf16.msra.mxu1 %v2789_v19  ;;  %2559 = vmatprep.subr.bf16.mxu0 %v2790_v20  ;;  %v2841_v60 = vld [vmem:[%s3040_s13 + $0xf4] ss:$20 sps:$4 sm:$0xff]   ;;  %v2843_v61 = vld [vmem:[%s3040_s13 + $0xfc] ss:$20 sps:$4 sm:$0xff]   ;;  %v2846_v63 = vld [vmem:[%s3040_s13 + $0xf8] ss:$20 sps:$4 sm:$0xff]  }
  0x27   : > { %2623 = vmatprep.subr.bf16.mxu1 %v2791_v21  ;;  %v2845_v62 = vld [vmem:[%s3040_s13 + $0xf0] ss:$20 sps:$4 sm:$0xff]   ;;  %v2852_v2 = vld [vmem:[%s3040_s13 + $0x118] ss:$20 sps:$4 sm:$0xff]   ;;  %v2853_v3 = vld [vmem:[%s3040_s13 + $0x120] ss:$20 sps:$4 sm:$0xff]  }
  0x28   : > { %v2848_v0 = vld [vmem:[%s3040_s13 + $0x11c] ss:$20 sps:$4 sm:$0xff]   ;;  %v2850_v1 = vld [vmem:[%s3040_s13 + $0x124] ss:$20 sps:$4 sm:$0xff]   ;;  %v2858_v8 = vld [vmem:[%s3040_s13 + $0x60] ss:$20 sps:$4 sm:$0xff]  }
  0x29   : > { %2560 = vmatpush3.bf16.msra.mxu0 %v2792_v22  ;;  %v2854_v4 = vld [vmem:[%s3040_s13 + $0x10] ss:$20 sps:$4 sm:$0xff]   ;;  %v2856_v6 = vld [vmem:[%s3040_s13 + $0x38] ss:$20 sps:$4 sm:$0xff]   ;;  %v2859_v9 = vld [vmem:[%s3040_s13 + $0x100] ss:$20 sps:$4 sm:$0xff]  }
  0x2a   : > { %2624 = vmatpush3.bf16.msra.mxu1 %v2793_v23  ;;  %2561 = vmatprep.subr.bf16.mxu0 %v2794_v24  ;;  %v2855_v5 = vld [vmem:[%s3040_s13 + $0xb0] ss:$20 sps:$4 sm:$0xff]   ;;  %v2857_v7 = vld [vmem:[%s3040_s13 + $0xd8] ss:$20 sps:$4 sm:$0xff]   ;;  %v2860_v10 = vld [vmem:[%s3040_s13 + $0x88] ss:$20 sps:$4 sm:$0xff]  }
  0x2b   : > { %2625 = vmatprep.subr.bf16.mxu1 %v2795_v25  ;;  %v2861_v11 = vld [vmem:[%s3040_s13 + $0x128] ss:$20 sps:$4 sm:$0xff]  }
  0x2d   : > { %2562 = vmatpush3.bf16.msra.mxu0 %v2796_v26 }
  0x2e   : > { %2626 = vmatpush3.bf16.msra.mxu1 %v2797_v27  ;;  %2563 = vmatprep.subr.bf16.mxu0 %v2798_v28 }
  0x2f   : > { %2627 = vmatprep.subr.bf16.mxu1 %v2799_v29 }
  0x31   : > { %2564 = vmatpush3.bf16.msra.mxu0 %v2800_v30 }
  0x32   : > { %2628 = vmatpush3.bf16.msra.mxu1 %v2801_v31  ;;  %2703 = vmatprep.subr.bf16.mxu0 %v2808_v36 }
  0x33   : > { %2751 = vmatprep.subr.bf16.mxu1 %v2808_v36 }
  0x34   : > { %1161 = vmatmul.mubr.bf16.vlgmr.msra.gmra.mxu0 %v2802_v32 }
  0x35   : > { %1258 = vmatmul.mubr.bf16.vlgmr.msra.gmra.mxu1 %v2805_v34  ;;  %2704 = vmatpush3.bf16.msra.mxu0 %v2808_v36 }
  0x36   : > { %2755 = vmatpush3.bf16.msra.mxu1 %v2808_v36  ;;  %1168 = vmatprep.mubr.bf16.mxu0 %v2809_v37 }
  0x37   : > { %1265 = vmatprep.mubr.bf16.mxu1 %v2811_v38  ;;  %2705 = vmatprep.subr.bf16.mxu0 %v2821_v42 }
  0x38   : > { %2752 = vmatprep.subr.bf16.mxu1 %v2821_v42 }
  0x39   : > { %2706 = vmatpush3.bf16.msra.mxu0 %v2821_v42 }
  0x3a   : > { %2756 = vmatpush3.bf16.msra.mxu1 %v2821_v42  ;;  %2707 = vmatprep.subr.bf16.mxu0 %v2834_v46 }
  0x3b   : > { %2753 = vmatprep.subr.bf16.mxu1 %v2834_v46 }
  0x3c   : > { %1169 = vmatmul.mubr.bf16.gmra.mxu0 %v2813_v39 }
  0x3d   : > { %1266 = vmatmul.mubr.bf16.gmra.mxu1 %v2814_v40  ;;  %1176 = vmatprep.mubr.bf16.mxu0 %v2815_v41 }
  0x3e   : > { %1273 = vmatprep.mubr.bf16.mxu1 %v2817_v43  ;;  %2708 = vmatpush3.bf16.msra.mxu0 %v2834_v46 }
  0x3f   : > { %2757 = vmatpush3.bf16.msra.mxu1 %v2834_v46  ;;  %2709 = vmatprep.subr.bf16.mxu0 %v2847_v49 }
  0x40   : > { %2754 = vmatprep.subr.bf16.mxu1 %v2847_v49 }
  0x42   : > { %2710 = vmatpush3.bf16.msra.mxu0 %v2847_v49 }
  0x43   : > { %2758 = vmatpush3.bf16.msra.mxu1 %v2847_v49 }
  0x44   : > { %1177 = vmatmul.mubr.bf16.gmra.mxu0 %v2819_v44 }
  0x45   : > { %1274 = vmatmul.mubr.bf16.gmra.mxu1 %v2820_v45  ;;  %1184 = vmatprep.mubr.bf16.mxu0 %v2822_v47 }
  0x46   : > { %1281 = vmatprep.mubr.bf16.mxu1 %v2824_v48 }
  0x4c   : > { %1185 = vmatmul.mubr.bf16.gmra.mxu0 %v2826_v50 }
  0x4d   : > { %1282 = vmatmul.mubr.bf16.gmra.mxu1 %v2827_v51  ;;  %1192 = vmatprep.mubr.bf16.mxu0 %v2828_v52 }
  0x4e   : > { %1289 = vmatprep.mubr.bf16.mxu1 %v2830_v53 }
  0x54   : > { %1193 = vmatmul.mubr.bf16.gmra.mxu0 %v2832_v54 }
  0x55   : > { %1290 = vmatmul.mubr.bf16.gmra.mxu1 %v2833_v55  ;;  %1200 = vmatprep.mubr.bf16.mxu0 %v2835_v56 }
  0x56   : > { %1297 = vmatprep.mubr.bf16.mxu1 %v2837_v57 }
  0x5c   : > { %1201 = vmatmul.mubr.bf16.gmra.mxu0 %v2839_v58 }
  0x5d   : > { %1298 = vmatmul.mubr.bf16.gmra.mxu1 %v2840_v59  ;;  %1208 = vmatprep.mubr.bf16.mxu0 %v2841_v60 }
  0x5e   : > { %1305 = vmatprep.mubr.bf16.mxu1 %v2843_v61 }
  0x64   : > { %1209 = vmatmul.mubr.bf16.gmra.mxu0 %v2845_v62 }
  0x65   : > { %1306 = vmatmul.mubr.bf16.gmra.mxu1 %v2846_v63  ;;  %1216 = vmatprep.mubr.bf16.mxu0 %v2848_v0 }
  0x66   : > { %1313 = vmatprep.mubr.bf16.mxu1 %v2850_v1 }
  0x6c   : > { %1217 = vmatmul.mubr.bf16.gmra.mxu0 %v2852_v2 }
  0x6d   : > { %1314 = vmatmul.mubr.bf16.gmra.mxu1 %v2853_v3  ;;  %2711 = vmatprep.mubr.msk.bf16.mxu0 %vm1103_vm0, %v2854_v4 }
  0x6e   : > { %2719 = vmatprep.mubr.msk.bf16.mxu1 %vm1103_vm0, %v2855_v5 }
  0x74   : > { %2712 = vmatmul.mubr.msk.bf16.vlgmr.msra.gmra.mxu0 %vm1103_vm0, %v2856_v6 }
  0x75   : > { %2720 = vmatmul.mubr.msk.bf16.vlgmr.msra.gmra.mxu1 %vm1103_vm0, %v2857_v7  ;;  %2715 = vmatprep.mubr.msk.bf16.mxu0 %vm1103_vm0, %v2858_v8 }
  0x76   : > { %2723 = vmatprep.mubr.msk.bf16.mxu1 %vm1103_vm0, %v2859_v9 }
  0x7c   : > { %2716 = vmatmul.mubr.msk.bf16.gmra.mxu0 %vm1103_vm0, %v2860_v10 }
  0x7d   : > { %2724 = vmatmul.mubr.msk.bf16.gmra.mxu1 %vm1103_vm0, %v2861_v11 }
  0xf4   : > { %v2565_v12 = vpop.f32.mrf.mxu0 }
  0xf5   : > { %v2629_v13 = vpop.f32.mrf.mxu1 }
  0xf6   : > { %v2566_v14 = vpop.f32.mrf.mxu0 }
  0xf7   : > { %v2567_v15 = vadd.f32 %v2566_v14, %v2565_v12  ;;  %v2630_v16 = vpop.f32.mrf.mxu1 }
  0xf8   : > { %v2631_v17 = vadd.f32 %v2630_v16, %v2629_v13  ;;  %v2568_v18 = vpop.f32.mrf.mxu0 }
  0xf9   : > { %v2632_v19 = vpop.f32.mrf.mxu1 }
  0xfa   : > { %v2569_v20 = vpop.f32.mrf.mxu0  ;;  %v3096_v21 = vadd.f32 %v2631_v17, %v2567_v15 }
  0xfb   : > { %v2570_v22 = vadd.f32 %v2569_v20, %v2568_v18  ;;  %v2633_v23 = vpop.f32.mrf.mxu1 }
  0xfc   : > { %v2634_v24 = vadd.f32 %v2633_v23, %v2632_v19  ;;  %v2571_v25 = vpop.f32.mrf.mxu0 }
  0xfd   : > { %v2635_v26 = vpop.f32.mrf.mxu1 }
  0xfe   : > { %v2572_v27 = vpop.f32.mrf.mxu0  ;;  %v3098_v28 = vadd.f32 %v2634_v24, %v2570_v22 }
  0xff   : > { %v2573_v29 = vadd.f32 %v2572_v27, %v2571_v25  ;;  %v2636_v30 = vpop.f32.mrf.mxu1 }
 0x100   : > { %3445 = vst [vmem:[#allocation2_spill] sm:$0xff] %v3098_v28  ;;  %v2637_v31 = vadd.f32 %v2636_v30, %v2635_v26  ;;  %v2574_v32 = vpop.f32.mrf.mxu0 }
 0x101   : > { %v2638_v33 = vpop.f32.mrf.mxu1 }
 0x102   : > { %v2575_v34 = vpop.f32.mrf.mxu0  ;;  %v3100_v35 = vadd.f32 %v2637_v31, %v2573_v29 }
 0x103   : > { %v2639_v36 = vpop.f32.mrf.mxu1  ;;  %v2576_v13 = vadd.f32 %v2575_v34, %v2574_v32 }
 0x104   : > { %v2577_v37 = vpop.f32.mrf.mxu0  ;;  %v2640_v14 = vadd.f32 %v2639_v36, %v2638_v33 }
 0x105   : > { %v2641_v38 = vpop.f32.mrf.mxu1 }
 0x106   : > { %v2578_v39 = vpop.f32.mrf.mxu0  ;;  %v1271_v30 = vadd.f32 %v2640_v14, %v2576_v13 }
 0x107   : > { %v2642_v40 = vpop.f32.mrf.mxu1  ;;  %v2579_v16 = vadd.f32 %v2578_v39, %v2577_v37 }
 0x108   : > { %v2580_v41 = vpop.f32.mrf.mxu0  ;;  %v2643_v17 = vadd.f32 %v2642_v40, %v2641_v38 }
 0x109   : > { %v2644_v42 = vpop.f32.mrf.mxu1 }
 0x10a   : > { %v2581_v43 = vpop.f32.mrf.mxu0  ;;  %v3106_v33 = vadd.f32 %v2643_v17, %v2579_v16 }
 0x10b   : > { %v2645_v44 = vpop.f32.mrf.mxu1  ;;  %v2582_v18 = vadd.f32 %v2581_v43, %v2580_v41 }
 0x10c   : > { %v2583_v45 = vpop.f32.mrf.mxu0  ;;  %v2646_v19 = vadd.f32 %v2645_v44, %v2644_v42 }
 0x10d   : > { %v2647_v46 = vpop.f32.mrf.mxu1 }
 0x10e   : > { %v2584_v47 = vpop.f32.mrf.mxu0  ;;  %v3108_v34 = vadd.f32 %v2646_v19, %v2582_v18  ;;  %v3446_v19 = vld [vmem:[#allocation2_spill] sm:$0xff] }
 0x10f   : > { %v2648_v48 = vpop.f32.mrf.mxu1  ;;  %v2585_v22 = vadd.f32 %v2584_v47, %v2583_v45 }
 0x110   : > { %v2586_v49 = vpop.f32.mrf.mxu0  ;;  %v2649_v23 = vadd.f32 %v2648_v48, %v2647_v46 }
 0x111   : > { %v2650_v50 = vpop.f32.mrf.mxu1 }
 0x112   : > { %v2587_v51 = vpop.f32.mrf.mxu0  ;;  %v1284_v40 = vadd.f32 %v2649_v23, %v2585_v22 }
 0x113   : > { %v2651_v52 = vpop.f32.mrf.mxu1  ;;  %v2588_v31 = vadd.f32 %v2587_v51, %v2586_v49  ;;  %v3114_v51 = vld [vmem:[%s532_s23] ss:$0 sm:$0xff] }
 0x114   : > { %v2589_v53 = vpop.f32.mrf.mxu0  ;;  %v2652_v28 = vadd.f32 %v2651_v52, %v2650_v50 }
 0x115   : > { %v2653_v54 = vpop.f32.mrf.mxu1 }
 0x116   : > { %v2590_v55 = vpop.f32.mrf.mxu0 }
 0x117   : > { %v2654_v56 = vpop.f32.mrf.mxu1  ;;  %v2591_v36 = vadd.f32 %v2590_v55, %v2589_v53 }
 0x118   : > { %v2592_v57 = vpop.f32.mrf.mxu0  ;;  %v2655_v37 = vadd.f32 %v2654_v56, %v2653_v54  ;;  %v1287_v56 = vadd.f32 %v2652_v28, %v2588_v31 }
 0x119   : > { %v2656_v58 = vpop.f32.mrf.mxu1 }
 0x11a   : > { %v2593_v59 = vpop.f32.mrf.mxu0 }
 0x11b   : > { %v2657_v60 = vpop.f32.mrf.mxu1  ;;  %v2594_v38 = vadd.f32 %v2593_v59, %v2592_v57  ;;  %v3117_v59 = vld [vmem:[%s535_s26] ss:$0 sm:$0xff] }
 0x11c   : > { %v2595_v61 = vpop.f32.mrf.mxu0  ;;  %v2658_v41 = vadd.f32 %v2657_v60, %v2656_v58 }
 0x11d   : > { %v2659_v62 = vpop.f32.mrf.mxu1 }
 0x11e   : > { %v2596_v63 = vpop.f32.mrf.mxu0 }
 0x11f   : > { %v2660_v0 = vpop.f32.mrf.mxu1  ;;  %v2597_v25 = vadd.f32 %v2596_v63, %v2595_v61 }
 0x120   : > { %v2598_v1 = vpop.f32.mrf.mxu0  ;;  %v2661_v26 = vadd.f32 %v2660_v0, %v2659_v62  ;;  %v1292_v62 = vadd.f32 %v2655_v37, %v2591_v36 }
 0x121   : > { %v2662_v2 = vpop.f32.mrf.mxu1 }
 0x122   : > { %v2599_v3 = vpop.f32.mrf.mxu0  ;;  %v1300_v45 = vadd.f32 %v2661_v26, %v2597_v25 }
 0x123   : > { %v2663_v4 = vpop.f32.mrf.mxu1  ;;  %v2600_v42 = vadd.f32 %v2599_v3, %v2598_v1  ;;  %v1295_v3 = vadd.f32 %v2658_v41, %v2594_v38 }
 0x124   : > { %v2601_v5 = vpop.f32.mrf.mxu0  ;;  %v2664_v43 = vadd.f32 %v2663_v4, %v2662_v2 }
 0x125   : > { %v2665_v6 = vpop.f32.mrf.mxu1 }
 0x126   : > { %v2602_v7 = vpop.f32.mrf.mxu0  ;;  %v1303_v2 = vadd.f32 %v2664_v43, %v2600_v42 }
 0x127   : > { %v2666_v8 = vpop.f32.mrf.mxu1  ;;  %v2603_v46 = vadd.f32 %v2602_v7, %v2601_v5 }
 0x128   : > { %v2604_v9 = vpop.f32.mrf.mxu0  ;;  %v2667_v47 = vadd.f32 %v2666_v8, %v2665_v6 }
 0x129   : > { %v2668_v10 = vpop.f32.mrf.mxu1 }
 0x12a   : > { %v2605_v11 = vpop.f32.mrf.mxu0  ;;  %v1308_v6 = vadd.f32 %v2667_v47, %v2603_v46 }
 0x12b   : > { %v2669_v12 = vpop.f32.mrf.mxu1  ;;  %v2606_v48 = vadd.f32 %v2605_v11, %v2604_v9 }
 0x12c   : > { %v2607_v15 = vpop.f32.mrf.mxu0  ;;  %v2670_v49 = vadd.f32 %v2669_v12, %v2668_v10 }
 0x12d   : > { %v2671_v20 = vpop.f32.mrf.mxu1 }
 0x12e   : > { %v2608_v24 = vpop.f32.mrf.mxu0  ;;  %v1311_v28 = vadd.f32 %v2670_v49, %v2606_v48 }
 0x12f   : > { %v2672_v27 = vpop.f32.mrf.mxu1  ;;  %v2609_v52 = vadd.f32 %v2608_v24, %v2607_v15 }
 0x130   : > { %v2610_v29 = vpop.f32.mrf.mxu0  ;;  %v2673_v53 = vadd.f32 %v2672_v27, %v2671_v20 }
 0x131   : > { %v2674_v32 = vpop.f32.mrf.mxu1 }
 0x132   : > { %v2611_v39 = vpop.f32.mrf.mxu0  ;;  %v1316_v11 = vadd.f32 %v2673_v53, %v2609_v52 }
 0x133   : > { %v2675_v44 = vpop.f32.mrf.mxu1  ;;  %v2612_v57 = vadd.f32 %v2611_v39, %v2610_v29 }
 0x134   : > { %v2713_v50 = vpop.f32.mrf.mxu0  ;;  %v2676_v58 = vadd.f32 %v2675_v44, %v2674_v32 }
 0x135   : > { %v1365_v54 = vadd.f32 %v2713_v50, %v3100_v35  ;;  %v2721_v55 = vpop.f32.mrf.mxu1 }
 0x136   : > { %v1397_v60 = vadd.f32 %v2721_v55, %v1300_v45  ;;  %v1356_v61 = vpop.f32.mrf.mxu0  ;;  %v1319_v15 = vadd.f32 %v2676_v58, %v2612_v57 }
 0x137   : > { %v1428_v63 = vmul.f32 %v3114_v51, %v1365_v54  ;;  %v1357_v0 = vadd.f32 %v1356_v61, %v3096_v21  ;;  %v1388_v1 = vpop.f32.mrf.mxu1 }
 0x138   : > { %v1436_v4 = vmul.f32 %v3114_v51, %v1397_v60  ;;  %v1389_v5 = vadd.f32 %v1388_v1, %v1292_v62  ;;  %v2714_v35 = vpop.f32.mrf.mxu0 }
 0x139   : > { %v1451_v7 = vadd.f32 %v3117_v59, %v1428_v63  ;;  %v1426_v8 = vmul.f32 %v3114_v51, %v1357_v0  ;;  %v1368_v9 = vadd.f32 %v2714_v35, %v1271_v30  ;;  %v2722_v10 = vpop.f32.mrf.mxu1 }
 0x13a   : > { %v1459_v12 = vadd.f32 %v3117_v59, %v1436_v4  ;;  %v1434_v21 = vmul.f32 %v3114_v51, %v1389_v5  ;;  %v1400_v13 = vadd.f32 %v2722_v10, %v1303_v2  ;;  %v1359_v14 = vpop.f32.mrf.mxu0 }
 0x13b   : > { %v3126_v16 = vmax.f32 %v1451_v7, 0.0  ;;  %v1449_v17 = vadd.f32 %v3117_v59, %v1426_v8  ;;  %v1429_v18 = vmul.f32 %v3114_v51, %v1368_v9  ;;  %v1360_v20 = vadd.f32 %v1359_v14, %v3446_v19  ;;  %v1391_v22 = vpop.f32.mrf.mxu1 }
 0x13c   : > { %v3131_v23 = vmax.f32 %v1459_v12, 0.0  ;;  %v1457_v24 = vadd.f32 %v3117_v59, %v1434_v21  ;;  %v1437_v25 = vmul.f32 %v3114_v51, %v1400_v13  ;;  %v1392_v26 = vadd.f32 %v1391_v22, %v1295_v3  ;;  %v2717_v27 = vpop.f32.mrf.mxu0 }
 0x13d   : > { %v3135_v29 = vmax.f32 %v1449_v17, 0.0  ;;  %v1452_v30 = vadd.f32 %v3117_v59, %v1429_v18  ;;  %v1427_v31 = vmul.f32 %v3114_v51, %v1360_v20  ;;  %v1381_v32 = vadd.f32 %v2717_v27, %v1284_v40  ;;  %v2725_v36 = vpop.f32.mrf.mxu1 }
 0x13e   : > { %v3139_v37 = vmax.f32 %v1457_v24, 0.0  ;;  %v1460_v38 = vadd.f32 %v3117_v59, %v1437_v25  ;;  %v1435_v39 = vmul.f32 %v3114_v51, %v1392_v26  ;;  %v1413_v41 = vadd.f32 %v2725_v36, %v1316_v11  ;;  %v1372_v42 = vpop.f32.mrf.mxu0 }
 0x13f   : > { %v3143_v43 = vmax.f32 %v1452_v30, 0.0  ;;  %v1450_v44 = vadd.f32 %v3117_v59, %v1427_v31  ;;  %v1432_v45 = vmul.f32 %v3114_v51, %v1381_v32  ;;  %v1373_v46 = vadd.f32 %v1372_v42, %v3106_v33  ;;  %v1404_v47 = vpop.f32.mrf.mxu1 }
 0x140   : > { %v3148_v48 = vmax.f32 %v1460_v38, 0.0  ;;  %v1458_v40 = vadd.f32 %v3117_v59, %v1435_v39  ;;  %v1440_v49 = vmul.f32 %v3114_v51, %v1413_v41  ;;  %v1405_v50 = vadd.f32 %v1404_v47, %v1308_v6  ;;  %v2718_v52 = vpop.f32.mrf.mxu0 }
 0x141   : > { %v3152_v53 = vmax.f32 %v1450_v44, 0.0  ;;  %v1455_v54 = vadd.f32 %v3117_v59, %v1432_v45  ;;  %v1430_v55 = vmul.f32 %v3114_v51, %v1373_v46  ;;  %v1384_v57 = vadd.f32 %v2718_v52, %v1287_v56  ;;  %v2726_v58 = vpop.f32.mrf.mxu1 }
 0x142   : > { %v3156_v60 = vmax.f32 %v1458_v40, 0.0  ;;  %v1463_v33 = vadd.f32 %v3117_v59, %v1440_v49  ;;  %v1438_v61 = vmul.f32 %v3114_v51, %v1405_v50  ;;  %v1416_v62 = vadd.f32 %v2726_v58, %v1319_v15  ;;  %v1375_v63 = vpop.f32.mrf.mxu0 }
 0x143   : > { %v3160_v0 = vmax.f32 %v1455_v54, 0.0  ;;  %v1453_v1 = vadd.f32 %v3117_v59, %v1430_v55  ;;  %v1433_v2 = vmul.f32 %v3114_v51, %v1384_v57  ;;  %v1376_v3 = vadd.f32 %v1375_v63, %v3108_v34  ;;  %v1407_v4 = vpop.f32.mrf.mxu1 }
 0x144   : > { %v3165_v5 = vmax.f32 %v1463_v33, 0.0  ;;  %v1461_v56 = vadd.f32 %v3117_v59, %v1438_v61  ;;  %v1441_v35 = vmul.f32 %v3114_v51, %v1416_v62  ;;  %v1408_v6 = vadd.f32 %v1407_v4, %v1311_v28 }
 0x145   : > { %v3169_v7 = vmax.f32 %v1453_v1, 0.0  ;;  %v1456_v8 = vadd.f32 %v3117_v59, %v1433_v2  ;;  %v1431_v9 = vmul.f32 %v3114_v51, %v1376_v3 }
 0x146   : > { %v3173_v10 = vmax.f32 %v1461_v56, 0.0  ;;  %v1464_v11 = vadd.f32 %v3117_v59, %v1441_v35  ;;  %v1439_v34 = vmul.f32 %v3114_v51, %v1408_v6  ;;  %1484 = sbr.rel (%p2525_p6) target bundleno = 340 (0x154), region = 68 }
 0x147   : > { %v3177_v12 = vmax.f32 %v1456_v8, 0.0  ;;  %v1454_v21 = vadd.f32 %v3117_v59, %v1431_v9 }
 0x148   : > { %v3180_v13 = vmax.f32 %v1464_v11, 0.0  ;;  %v1462_v28 = vadd.f32 %v3117_v59, %v1439_v34 }
 0x149   : > { %v3183_v14 = vmax.f32 %v1454_v21, 0.0 }
 0x14a   : > { %v3185_v15 = vmax.f32 %v1462_v28, 0.0 }
 0x14b   : > { %vm1485_vm1 = vcmask 261120  }
 0x14c   : > { %1486 = vst.msk [vmem:[%s3007_s22] sm:$0xff] %vm1485_vm1, %v3135_v29  ;;  %1487 = vst.msk [vmem:[%s3007_s22 + $0x8] sm:$0xff] %vm1485_vm1, %v3152_v53 }
 0x14d   : > { %1488 = vst.msk [vmem:[%s3007_s22 + $0x10] sm:$0xff] %vm1485_vm1, %v3126_v16  ;;  %1489 = vst.msk [vmem:[%s3007_s22 + $0x18] sm:$0xff] %vm1485_vm1, %v3143_v43 }
 0x14e   : > { %1490 = vst.msk [vmem:[%s3007_s22 + $0x20] sm:$0xff] %vm1485_vm1, %v3169_v7  ;;  %1491 = vst.msk [vmem:[%s3007_s22 + $0x28] sm:$0xff] %vm1485_vm1, %v3183_v14 }
 0x14f   : > { %1492 = vst.msk [vmem:[%s3007_s22 + $0x30] sm:$0xff] %vm1485_vm1, %v3160_v0  ;;  %1493 = vst.msk [vmem:[%s3007_s22 + $0x38] sm:$0xff] %vm1485_vm1, %v3177_v12 }
 0x150   : > { %1494 = vst.msk [vmem:[%s3007_s22 + $0x40] sm:$0xff] %vm1485_vm1, %v3139_v37  ;;  %1495 = vst.msk [vmem:[%s3007_s22 + $0x48] sm:$0xff] %vm1485_vm1, %v3156_v60 }
 0x151   : > { %1496 = vst.msk [vmem:[%s3007_s22 + $0x50] sm:$0xff] %vm1485_vm1, %v3131_v23  ;;  %1497 = vst.msk [vmem:[%s3007_s22 + $0x58] sm:$0xff] %vm1485_vm1, %v3148_v48 }
 0x152   : > { %1498 = vst.msk [vmem:[%s3007_s22 + $0x60] sm:$0xff] %vm1485_vm1, %v3173_v10  ;;  %1499 = vst.msk [vmem:[%s3007_s22 + $0x68] sm:$0xff] %vm1485_vm1, %v3185_v15 }
 0x153   : > { %1500 = vst.msk [vmem:[%s3007_s22 + $0x70] sm:$0xff] %vm1485_vm1, %v3165_v5  ;;  %1501 = vst.msk [vmem:[%s3007_s22 + $0x78] sm:$0xff] %vm1485_vm1, %v3180_v13 }
 0x154 PF: > { %p2526_p7 = scmp.le.s32.totalorder %s2953_s18, 0 }
 0x156   : > { %1505 = sbr.rel (%p2526_p7) target bundleno = 859 (0x35b), region = 72 }
 0x15b   : > { %v1692_v51 = vld [vmem:[%s2966_s24 + $0x18] sm:$0xff]  ;;  %v1691_v59 = vld [vmem:[%s2966_s24 + $0x10] sm:$0xff]  ;;  %vm1506_vm2 = vcmask 261120   ;;  %v1690_v22 = vld [vmem:[%s2966_s24 + $0x8] sm:$0xff]  ;;  %vm1668_vm3 = vcmask 1041409   ;;  %vm1670_vm4 = vcmask 1042434  }
 0x15c   : > { %2727 = vmatprep.subr.mxu0 %v1692_v51  ;;  %v3241_v17 = vsel %vm1506_vm2, %v3135_v29, 0.0  ;;  %v3245_v18 = vsel %vm1506_vm2, %v3152_v53, 0.0  ;;  %v3249_v19 = vsel %vm1506_vm2, %v3126_v16, 0.0  ;;  %v3253_v20 = vsel %vm1506_vm2, %v3143_v43, 0.0  ;;  %v1689_v38 = vld [vmem:[%s2966_s24] sm:$0xff] }
 0x15d   : > { %2728 = vmatpush3.msra.mxu0 %v1692_v51  ;;  %v1508_v24 = vrot.slane %v3241_v17, 4  ;;  %v1515_v25 = vrot.slane %v3245_v18, 4  ;;  %v1522_v26 = vrot.slane %v3249_v19, 4  ;;  %v1529_v27 = vrot.slane %v3253_v20, 4 }
 0x15e   : > { %2729 = vmatprep.subr.mxu0 %v1691_v59  ;;  %v3262_v30 = vsel %vm1506_vm2, %v3169_v7, 0.0  ;;  %v3266_v31 = vsel %vm1506_vm2, %v3183_v14, 0.0  ;;  %v3270_v32 = vsel %vm1506_vm2, %v3160_v0, 0.0  ;;  %v3274_v36 = vsel %vm1506_vm2, %v3177_v12, 0.0 }
 0x15f   : > { %2730 = vmatpush3.msra.mxu0 %v1691_v59  ;;  %v1509_v39 = vadd.f32 %v1508_v24, %v3241_v17  ;;  %v1516_v41 = vadd.f32 %v1515_v25, %v3245_v18  ;;  %v1523_v42 = vadd.f32 %v1522_v26, %v3249_v19  ;;  %v1530_v44 = vadd.f32 %v1529_v27, %v3253_v20 }
 0x160   : > { %2731 = vmatprep.subr.mxu0 %v1690_v22  ;;  %v1536_v45 = vrot.slane %v3262_v30, 4  ;;  %v1543_v46 = vrot.slane %v3266_v31, 4  ;;  %v1550_v47 = vrot.slane %v3270_v32, 4  ;;  %v1557_v40 = vrot.slane %v3274_v36, 4 }
 0x161   : > { %2732 = vmatpush3.msra.mxu0 %v1690_v22  ;;  %v1510_v49 = vrot.slane %v1509_v39, 2  ;;  %v1517_v50 = vrot.slane %v1516_v41, 2  ;;  %v1524_v52 = vrot.slane %v1523_v42, 2  ;;  %v1531_v54 = vrot.slane %v1530_v44, 2 }
 0x162   : > { %2733 = vmatprep.subr.mxu0 %v1689_v38  ;;  %v1537_v55 = vadd.f32 %v1536_v45, %v3262_v30  ;;  %v1544_v57 = vadd.f32 %v1543_v46, %v3266_v31  ;;  %v1551_v58 = vadd.f32 %v1550_v47, %v3270_v32  ;;  %v1558_v33 = vadd.f32 %v1557_v40, %v3274_v36 }
 0x163   : > { %2734 = vmatpush3.msra.mxu0 %v1689_v38  ;;  %v1511_v61 = vadd.f32 %v1510_v49, %v1509_v39  ;;  %v1518_v62 = vadd.f32 %v1517_v50, %v1516_v41  ;;  %v1525_v63 = vadd.f32 %v1524_v52, %v1523_v42  ;;  %v1532_v1 = vadd.f32 %v1531_v54, %v1530_v44 }
 0x164   : > { %v1538_v2 = vrot.slane %v1537_v55, 2  ;;  %v1545_v3 = vrot.slane %v1544_v57, 2  ;;  %v1552_v4 = vrot.slane %v1551_v58, 2  ;;  %v1559_v56 = vrot.slane %v1558_v33, 2 }
 0x165   : > { %v1512_v35 = vrot.slane %v1511_v61, 1  ;;  %v1519_v6 = vrot.slane %v1518_v62, 1  ;;  %v1526_v8 = vrot.slane %v1525_v63, 1  ;;  %v1533_v9 = vrot.slane %v1532_v1, 1 }
 0x166   : > { %v1539_v11 = vadd.f32 %v1538_v2, %v1537_v55  ;;  %v1546_v34 = vadd.f32 %v1545_v3, %v1544_v57  ;;  %v1553_v21 = vadd.f32 %v1552_v4, %v1551_v58  ;;  %v1560_v28 = vadd.f32 %v1559_v56, %v1558_v33 }
 0x167   : > { %v1513_v51 = vadd.f32 %v1512_v35, %v1511_v61  ;;  %v1520_v59 = vadd.f32 %v1519_v6, %v1518_v62  ;;  %v1527_v22 = vadd.f32 %v1526_v8, %v1525_v63  ;;  %v1534_v24 = vadd.f32 %v1533_v9, %v1532_v1 }
 0x168   : > { %v1540_v25 = vrot.slane %v1539_v11, 1  ;;  %v1547_v26 = vrot.slane %v1546_v34, 1  ;;  %v1554_v27 = vrot.slane %v1553_v21, 1  ;;  %v1561_v38 = vrot.slane %v1560_v28, 1 }
 0x169   : > { %v1620_v39 = vmul.f32 0.125, %v1513_v51  ;;  %v1621_v41 = vmul.f32 0.125, %v1520_v59  ;;  %v1622_v42 = vmul.f32 0.125, %v1527_v22  ;;  %v1623_v44 = vmul.f32 0.125, %v1534_v24 }
 0x16a   : > { %v1541_v45 = vadd.f32 %v1540_v25, %v1539_v11  ;;  %v1548_v46 = vadd.f32 %v1547_v26, %v1546_v34  ;;  %v1555_v47 = vadd.f32 %v1554_v27, %v1553_v21  ;;  %v1562_v40 = vadd.f32 %v1561_v38, %v1560_v28 }
 0x16b   : > { %v1669_v49 = vsel %vm1668_vm3, %v1621_v41, %v1620_v39  ;;  %vm1672_vm5 = vcmask 1043459   ;;  %vm1674_vm6 = vcmask 1044484   ;;  %vm1676_vm7 = vcmask 1045509  }
 0x16c   : > { %v1624_v50 = vmul.f32 0.125, %v1541_v45  ;;  %v1625_v52 = vmul.f32 0.125, %v1548_v46  ;;  %v1626_v54 = vmul.f32 0.125, %v1555_v47  ;;  %v1627_v55 = vmul.f32 0.125, %v1562_v40 }
 0x16d   : > { %v1671_v57 = vsel %vm1670_vm4, %v1622_v42, %v1669_v49  ;;  %vm1678_vm8 = vcmask 1046534   ;;  %vm1680_vm9 = vcmask 1047559   ;;  %v1636_v58 = vadd.f32 %v3245_v18, %v3241_v17 }
 0x16e   : > { %v1673_v33 = vsel %vm1672_vm5, %v1623_v44, %v1671_v57  ;;  %v3296_v61 = vsel %vm1506_vm2, %v3139_v37, 0.0  ;;  %v3300_v62 = vsel %vm1506_vm2, %v3156_v60, 0.0  ;;  %v3304_v63 = vsel %vm1506_vm2, %v3131_v23, 0.0 }
 0x16f   : > { %v1675_v1 = vsel %vm1674_vm6, %v1624_v50, %v1673_v33  ;;  %v1637_v2 = vadd.f32 %v1636_v58, %v3249_v19  ;;  %v1564_v17 = vrot.slane %v3296_v61, 4  ;;  %v1571_v18 = vrot.slane %v3300_v62, 4 }
 0x170   : > { %v1677_v3 = vsel %vm1676_vm7, %v1625_v52, %v1675_v1  ;;  %v1578_v4 = vrot.slane %v3304_v63, 4  ;;  %v3314_v56 = vsel %vm1506_vm2, %v3148_v48, 0.0  ;;  %v3318_v35 = vsel %vm1506_vm2, %v3173_v10, 0.0 }
 0x171   : > { %v1679_v6 = vsel %vm1678_vm8, %v1626_v54, %v1677_v3  ;;  %v1638_v19 = vadd.f32 %v1637_v2, %v3253_v20  ;;  %v1565_v8 = vadd.f32 %v1564_v17, %v3296_v61  ;;  %v1572_v9 = vadd.f32 %v1571_v18, %v3300_v62 }
 0x172   : > { %v1681_v11 = vsel %vm1680_vm9, %v1627_v55, %v1679_v6  ;;  %v1579_v34 = vadd.f32 %v1578_v4, %v3304_v63  ;;  %v1585_v21 = vrot.slane %v3314_v56, 4  ;;  %v1592_v28 = vrot.slane %v3318_v35, 4 }
 0x173   : > { %2735 = vmatprep.mubr.msk.f32.mxu0 %vm1506_vm2, %v1681_v11  ;;  %v1639_v51 = vadd.f32 %v1638_v19, %v3262_v30  ;;  %v1566_v59 = vrot.slane %v1565_v8, 2  ;;  %v1573_v22 = vrot.slane %v1572_v9, 2  ;;  %v1598_v20 = vsel %vm1506_vm2, %v3185_v15, 0.0 }
 0x174   : > { %v1580_v24 = vrot.slane %v1579_v34, 2  ;;  %v1586_v25 = vadd.f32 %v1585_v21, %v3314_v56  ;;  %v1593_v26 = vadd.f32 %v1592_v28, %v3318_v35  ;;  %v1599_v27 = vrot.slane %v1598_v20, 4 }
 0x175   : > { %v1640_v38 = vadd.f32 %v1639_v51, %v3266_v31  ;;  %v1567_v39 = vadd.f32 %v1566_v59, %v1565_v8  ;;  %v1574_v41 = vadd.f32 %v1573_v22, %v1572_v9  ;;  %v1605_v42 = vsel %vm1506_vm2, %v3165_v5, 0.0 }
 0x176   : > { %v1581_v44 = vadd.f32 %v1580_v24, %v1579_v34  ;;  %v1587_v30 = vrot.slane %v1586_v25, 2  ;;  %v1594_v45 = vrot.slane %v1593_v26, 2  ;;  %v1600_v46 = vadd.f32 %v1599_v27, %v1598_v20 }
 0x177   : > { %v1641_v47 = vadd.f32 %v1640_v38, %v3270_v32  ;;  %v1568_v40 = vrot.slane %v1567_v39, 1  ;;  %v1575_v49 = vrot.slane %v1574_v41, 1  ;;  %v1606_v50 = vrot.slane %v1605_v42, 4 }
 0x178   : > { %v1582_v52 = vrot.slane %v1581_v44, 1  ;;  %v1588_v54 = vadd.f32 %v1587_v30, %v1586_v25  ;;  %v1595_v55 = vadd.f32 %v1594_v45, %v1593_v26  ;;  %v1601_v57 = vrot.slane %v1600_v46, 2 }
 0x179   : > { %v1642_v31 = vadd.f32 %v1641_v47, %v3274_v36  ;;  %v1569_v58 = vadd.f32 %v1568_v40, %v1567_v39  ;;  %v1576_v33 = vadd.f32 %v1575_v49, %v1574_v41  ;;  %v1607_v1 = vadd.f32 %v1606_v50, %v1605_v42 }
 0x17a   : > { %v1583_v2 = vadd.f32 %v1582_v52, %v1581_v44  ;;  %v1589_v17 = vrot.slane %v1588_v54, 1  ;;  %v1596_v18 = vrot.slane %v1595_v55, 1  ;;  %v1602_v3 = vadd.f32 %v1601_v57, %v1600_v46 }
 0x17b   : > { %v1650_v4 = vmul.f32 0.125, %v1642_v31  ;;  %v1608_v6 = vrot.slane %v1607_v1, 2  ;;  %v1612_v32 = vsel %vm1506_vm2, %v3180_v13, 0.0  ;;  %v1628_v19 = vmul.f32 0.125, %v1569_v58 }
 0x17c   : > { %v1590_v8 = vadd.f32 %v1589_v17, %v1588_v54  ;;  %v1597_v9 = vadd.f32 %v1596_v18, %v1595_v55  ;;  %v1603_v11 = vrot.slane %v1602_v3, 1  ;;  %v1613_v34 = vrot.slane %v1612_v32, 4  ;;  %v2532_v17 = vld [vmem:[%s546_s14] ss:$0 sm:$0xff] }
 0x17d   : > { %2736 = vmatmul.mubr.msk.f32.vlgmr.msra.gmra.mxu0 %vm1506_vm2, %v1650_v4  ;;  %v1609_v36 = vadd.f32 %v1608_v6, %v1607_v1  ;;  %v1629_v21 = vmul.f32 0.125, %v1576_v33  ;;  %v1630_v28 = vmul.f32 0.125, %v1583_v2  ;;  %v1643_v51 = vadd.f32 %v3300_v62, %v3296_v61  ;;  %v1932_v33 = vld [vmem:[%s2995_s29] sm:$0xff] }
 0x17e   : > { %v1604_v59 = vadd.f32 %v1603_v11, %v1602_v3  ;;  %v1614_v22 = vadd.f32 %v1613_v34, %v1612_v32  ;;  %v1631_v24 = vmul.f32 0.125, %v1590_v8  ;;  %v1632_v25 = vmul.f32 0.125, %v1597_v9 }
 0x17f   : > { %v1610_v26 = vrot.slane %v1609_v36, 1  ;;  %v1682_v27 = vsel %vm1668_vm3, %v1629_v21, %v1628_v19  ;;  %v1644_v38 = vadd.f32 %v1643_v51, %v3304_v63  ;;  %vm1838_vm10 = vcmask 64512  }
 0x180   : > { %v1615_v39 = vrot.slane %v1614_v22, 2  ;;  %v1633_v41 = vmul.f32 0.125, %v1604_v59  ;;  %v1683_v44 = vsel %vm1670_vm4, %v1630_v28, %v1682_v27 }
 0x181   : > { %v1611_v30 = vadd.f32 %v1610_v26, %v1609_v36  ;;  %v1684_v45 = vsel %vm1672_vm5, %v1631_v24, %v1683_v44  ;;  %v1645_v46 = vadd.f32 %v1644_v38, %v3314_v56 }
 0x182   : > { %v1616_v47 = vadd.f32 %v1615_v39, %v1614_v22  ;;  %v1685_v61 = vsel %vm1674_vm6, %v1632_v25, %v1684_v45 }
 0x183   : > { %v1634_v62 = vmul.f32 0.125, %v1611_v30  ;;  %v1646_v40 = vadd.f32 %v1645_v46, %v3318_v35  ;;  %v1686_v63 = vsel %vm1676_vm7, %v1633_v41, %v1685_v61  ;;  %v1830_v35 = vld [vmem:[%s2990_s20] sm:$0xff]  ;;  %s3447_s20 = scalar_lea.vmem %s3441_s8, %s2959_s19 }
 0x184   : > { %v1617_v49 = vrot.slane %v1616_v47, 1  ;;  %2741 = vmatprep.subr.mxu1 %v1830_v35 }
 0x185   : > { %v1647_v50 = vadd.f32 %v1646_v40, %v1598_v20  ;;  %v1687_v54 = vsel %vm1678_vm8, %v1634_v62, %v1686_v63  ;;  %2742 = vmatpush3.msra.mxu1 %v1830_v35  ;;  %v2533_v62 = vld [vmem:[%s3447_s20] ss:$0 sm:$0xff] }
 0x186   : > { %v1618_v52 = vadd.f32 %v1617_v49, %v1616_v47  ;;  %2746 = vmatprep.subr.mxu1 %v1932_v33 }
 0x187   : > { %v1648_v55 = vadd.f32 %v1647_v50, %v1605_v42  ;;  %v2531_v42 = vld [vmem:[%s543_s27] ss:$0 sm:$0xff] }
 0x188   : > { %v1635_v57 = vmul.f32 0.125, %v1618_v52  ;;  %v2538_v50 = vld [vmem:[%s560_s16] ss:$0 sm:$0xff] }
 0x189   : > { %v1649_v56 = vadd.f32 %v1648_v55, %v1612_v32 }
 0x18a   : > { %v1688_v31 = vsel %vm1680_vm9, %v1635_v57, %v1687_v54 }
 0x18b   : > { %2738 = vmatprep.mubr.msk.f32.mxu0 %vm1506_vm2, %v1688_v31  ;;  %v1651_v58 = vmul.f32 0.125, %v1649_v56 }
 0x18d   : > { %2739 = vmatmul.mubr.msk.f32.gmra.mxu0 %vm1506_vm2, %v1651_v58 }
 0x23d   : > { %v2737_v20 = vpop.f32.mrf.mxu0 }
 0x23e   : > { %v1796_v4 = vmul.f32 %v2737_v20, %v2531_v42 }
 0x23f   : > { %v1769_v1 = vpop.f32.mrf.mxu0 }
 0x240   : > { %v1795_v2 = vmul.f32 %v2531_v42, %v1769_v1  ;;  %v1807_v19 = vadd.f32 %v2532_v17, %v1796_v4 }
 0x242   : > { %v1806_v18 = vadd.f32 %v2532_v17, %v1795_v2  ;;  %v1811_v11 = vadd.f32 3.0, %v1807_v19 }
 0x244   : > { %v1810_v3 = vadd.f32 3.0, %v1806_v18  ;;  %v1815_v59 = vmax.f32 %v1811_v11, 0.0 }
 0x246   : > { %v1814_v6 = vmax.f32 %v1810_v3, 0.0  ;;  %v1819_v27 = vmin.f32 %v1815_v59, 6.0  ;;  %v2039_v3 = vlaneseq }
 0x248   : > { %v1818_v32 = vmin.f32 %v1814_v6, 6.0  ;;  %v1823_v44 = vmul.f32 %v1819_v27, %v1807_v19 }
 0x24a   : > { %v1822_v8 = vmul.f32 %v1818_v32, %v1806_v18  ;;  %v1827_v47 = vmul.f32 0.16666667, %v1823_v44  ;;  %v2040_v32 = vshrl.u32 %v2039_v3, 7 }
 0x24c   : > { %v1826_v9 = vmul.f32 0.16666667, %v1822_v8 }
 0x24d   : > { %v2740_v34 = vpop.f32.mrf.mxu0 }
 0x24e   : > { %v1798_v36 = vmul.f32 %v2740_v34, %v2531_v42  ;;  %2743 = vmatprep.mubr.msk.f32.mxu1 %vm1838_vm10, %v1826_v9 }
 0x24f   : > { %v1779_v21 = vpop.f32.mrf.mxu0 }
 0x250   : > { %v1809_v28 = vadd.f32 %v2532_v17, %v1798_v36  ;;  %v1797_v51 = vmul.f32 %v2531_v42, %v1779_v21 }
 0x252   : > { %v1813_v22 = vadd.f32 3.0, %v1809_v28  ;;  %v1808_v24 = vadd.f32 %v2532_v17, %v1797_v51  ;;  %v2886_v17 = vmov 1966171168   ;;  %v2135_v51 = vsub.s32 0, %v2040_v32 }
 0x253   : > { %v2037_v18 = vunpack.c.l.s4 %v2886_v17 }
 0x254   : > { %v1817_v25 = vmax.f32 %v1813_v22, 0.0  ;;  %v1812_v26 = vadd.f32 3.0, %v1808_v24 }
 0x255   : > { %v2038_v6 = vunpack.c.0.s8 %v2037_v18 }
 0x256   : > { %v1816_v38 = vmax.f32 %v1812_v26, 0.0  ;;  %v1821_v39 = vmin.f32 %v1817_v25, 6.0 }
 0x257   : > { %v2041_v9 = vsub.s32 %v2038_v6, %v2040_v32 }
 0x258   : > { %v1820_v41 = vmin.f32 %v1816_v38, 6.0  ;;  %v1825_v45 = vmul.f32 %v1821_v39, %v1809_v28 }
 0x25a   : > { %v1824_v30 = vmul.f32 %v1820_v41, %v1808_v24  ;;  %v1829_v61 = vmul.f32 0.16666667, %v1825_v45 }
 0x25c   : > { %v1828_v46 = vmul.f32 0.16666667, %v1824_v30 }
 0x25e   : > { %2744 = vmatmul.mubr.msk.f32.vlgmr.msra.gmra.mxu1 %vm1838_vm10, %v1828_v46 }
 0x25f   : > { %2748 = vmatprep.mubr.msk.f32.mxu1 %vm1838_vm10, %v1827_v47  ;;  %2747 = vmatpush3.msra.mxu1 %v1932_v33 }
 0x262   : > { %2749 = vmatmul.mubr.msk.f32.vlgmr.msra.gmra.mxu1 %vm1838_vm10, %v1829_v61 }
 0x31e   : > { %v2745_v40 = vpop.f32.mrf.mxu1 }
 0x31f   : > { %v1917_v49 = vadd.f32 %v2745_v40, %v2533_v62 }
 0x320   : > { %v1911_v63 = vpop.f32.mrf.mxu1 }
 0x321   : > { %v2537_v52 = vmul.f32 -1.442695, %v1917_v49  ;;  %v1912_v54 = vadd.f32 %v2533_v62, %v1911_v63 }
 0x322   : > { %v2750_v55 = vpop.f32.mrf.mxu1 }
 0x323   : > { %2862 = vpow2.f32 %v2537_v52  ;;  %v2536_v57 = vmul.f32 -1.442695, %v1912_v54  ;;  %v2018_v56 = vadd.f32 %v2750_v55, %v2538_v50 }
 0x324   : > { %v2012_v31 = vpop.f32.mrf.mxu1 }
 0x325   : > { %2864 = vpow2.f32 %v2536_v57  ;;  %v2542_v58 = vmul.f32 -1.442695, %v2018_v56  ;;  %v2013_v35 = vadd.f32 %v2538_v50, %v2012_v31 }
 0x327   : > { %2866 = vpow2.f32 %v2542_v58  ;;  %v2541_v33 = vmul.f32 -1.442695, %v2013_v35 }
 0x329   : > { %2868 = vpow2.f32 %v2541_v33 }
 0x330   : > { %v2863_v20 = vpop.eup %2862 }
 0x331   : > { %v1927_v42 = vadd.f32 1.0, %v2863_v20 }
 0x332   : > { %v2865_v1 = vpop.eup %2864 }
 0x333   : > { %2870 = vrcp.f32 %v1927_v42  ;;  %v1926_v2 = vadd.f32 1.0, %v2865_v1 }
 0x334   : > { %v2867_v4 = vpop.eup %2866 }
 0x335   : > { %2872 = vrcp.f32 %v1926_v2  ;;  %v2028_v19 = vadd.f32 1.0, %v2867_v4 }
 0x336   : > { %v2869_v8 = vpop.eup %2868 }
 0x337   : > { %2874 = vrcp.f32 %v2028_v19  ;;  %v2027_v34 = vadd.f32 1.0, %v2869_v8 }
 0x339   : > { %2876 = vrcp.f32 %v2027_v34 }
 0x340   : > { %v2871_v11 = vpop.eup %2870 }
 0x341   : > { %v2084_v36 = vcombine.high %v2871_v11, %v2871_v11  ;;  %v2091_v21 = vrot.slane %v2871_v11, %v2041_v9 }
 0x342   : > { %v2873_v28 = vpop.eup %2872 }
 0x343   : > { %v2098_v59 = vrot.slane %v2084_v36, %v2041_v9  ;;  %v2099_v22 = vcombine.high %v2091_v21, %v2091_v21  ;;  %v2107_v24 = vrot.slane %v2091_v21, %v2041_v9  ;;  %v2035_v25 = vcombine.high %v2873_v28, %v2873_v28 }
 0x344   : > { %v2042_v26 = vrot.slane %v2873_v28, %v2041_v9 }
 0x345   : > { %v2100_v27 = vcombine.high %v2098_v59, %v2098_v59  ;;  %v2114_v38 = vrot.slane %v2098_v59, %v2041_v9  ;;  %v2121_v39 = vrot.slane %v2099_v22, %v2041_v9  ;;  %v2129_v41 = vcombine.high %v2107_v24, %v2107_v24 }
 0x346   : > { %v2168_v44 = vrot.slane %v2107_v24, %v2135_v51  ;;  %v2049_v30 = vrot.slane %v2035_v25, %v2041_v9  ;;  %v2050_v45 = vcombine.high %v2042_v26, %v2042_v26  ;;  %v2058_v46 = vrot.slane %v2042_v26, %v2041_v9 }
 0x347   : > { %v2128_v47 = vrot.slane %v2100_v27, %v2041_v9  ;;  %v2130_v61 = vcombine.high %v2114_v38, %v2114_v38  ;;  %v2131_v62 = vcombine.high %v2121_v39, %v2121_v39  ;;  %v2172_v40 = vrot.slane %v2121_v39, %v2135_v51 }
 0x348   : > { %v2176_v49 = vrot.slane %v2129_v41, %v2135_v51  ;;  %v2184_v63 = vrot.slane %v2114_v38, %v2135_v51  ;;  %v2221_v50 = vmul.f32 %v2168_v44, %v3139_v37  ;;  %v2051_v52 = vcombine.high %v2049_v30, %v2049_v30  ;;  %v2875_v37 = vpop.eup %2874 }
 0x349   : > { %v2132_v54 = vcombine.high %v2128_v47, %v2128_v47  ;;  %v2180_v55 = vrot.slane %v2131_v62, %v2135_v51  ;;  %v2188_v57 = vrot.slane %v2128_v47, %v2135_v51  ;;  %v2192_v56 = vrot.slane %v2130_v61, %v2135_v51  ;;  %v2877_v28 = vpop.eup %2876 }
 0x34a   : > { %v2222_v31 = vmul.f32 %v2172_v40, %v3156_v60  ;;  %v2223_v58 = vmul.f32 %v2176_v49, %v3131_v23  ;;  %v2225_v35 = vmul.f32 %v2184_v63, %v3173_v10  ;;  %v2065_v33 = vrot.slane %v2049_v30, %v2041_v9 }
 0x34b   : > { %v2196_v20 = vrot.slane %v2132_v54, %v2135_v51  ;;  %v2224_v42 = vmul.f32 %v2180_v55, %v3148_v48  ;;  %v2226_v1 = vmul.f32 %v2188_v57, %v3185_v15  ;;  %v2227_v2 = vmul.f32 %v2192_v56, %v3165_v5 }
 0x34c   : > { %v2072_v17 = vrot.slane %v2050_v45, %v2041_v9  ;;  %v2079_v18 = vrot.slane %v2051_v52, %v2041_v9  ;;  %v2080_v3 = vcombine.high %v2058_v46, %v2058_v46  ;;  %v2081_v4 = vcombine.high %v2065_v33, %v2065_v33 }
 0x34d   : > { %v2228_v60 = vmul.f32 %v2196_v20, %v3180_v13  ;;  %v2136_v6 = vrot.slane %v2058_v46, %v2135_v51  ;;  %v2152_v23 = vrot.slane %v2065_v33, %v2135_v51  ;;  %v2237_v32 = vmul.f32 %v2875_v37, %v2221_v50 }
 0x34e   : > { %v2082_v10 = vcombine.high %v2072_v17, %v2072_v17  ;;  %v2083_v19 = vcombine.high %v2079_v18, %v2079_v18  ;;  %v2140_v8 = vrot.slane %v2072_v17, %v2135_v51  ;;  %v2144_v11 = vrot.slane %v2080_v3, %v2135_v51 }
 0x34f   : > { %v2156_v48 = vrot.slane %v2079_v18, %v2135_v51  ;;  %v2160_v34 = vrot.slane %v2081_v4, %v2135_v51  ;;  %v2213_v15 = vmul.f32 %v2136_v6, %v3135_v29  ;;  %v2217_v5 = vmul.f32 %v2152_v23, %v3169_v7  ;;  %2253 = vst.msk [vmem:[%s3007_s22 + $0x40] sm:$0xff] %vm1506_vm2, %v2237_v32 }
 0x350   : > { %v2148_v9 = vrot.slane %v2082_v10, %v2135_v51  ;;  %v2164_v36 = vrot.slane %v2083_v19, %v2135_v51  ;;  %v2214_v13 = vmul.f32 %v2140_v8, %v3152_v53  ;;  %v2215_v21 = vmul.f32 %v2144_v11, %v3126_v16 }
 0x351   : > { %v2218_v59 = vmul.f32 %v2156_v48, %v3183_v14  ;;  %v2219_v22 = vmul.f32 %v2160_v34, %v3160_v0  ;;  %v2238_v29 = vmul.f32 %v2875_v37, %v2222_v31  ;;  %v2239_v24 = vmul.f32 %v2875_v37, %v2223_v58 }
 0x352   : > { %v2216_v7 = vmul.f32 %v2148_v9, %v3143_v43  ;;  %v2220_v25 = vmul.f32 %v2164_v36, %v3177_v12  ;;  %v2240_v51 = vmul.f32 %v2875_v37, %v2224_v42  ;;  %v2241_v53 = vmul.f32 %v2875_v37, %v2225_v35 }
 0x353   : > { %v2242_v26 = vmul.f32 %v2875_v37, %v2226_v1  ;;  %v2243_v16 = vmul.f32 %v2875_v37, %v2227_v2  ;;  %v2244_v27 = vmul.f32 %v2875_v37, %v2228_v60  ;;  %2254 = vst.msk [vmem:[%s3007_s22 + $0x48] sm:$0xff] %vm1506_vm2, %v2238_v29  ;;  %2255 = vst.msk [vmem:[%s3007_s22 + $0x50] sm:$0xff] %vm1506_vm2, %v2239_v24 }
 0x354   : > { %v2229_v0 = vmul.f32 %v2877_v28, %v2213_v15  ;;  %2256 = vst.msk [vmem:[%s3007_s22 + $0x58] sm:$0xff] %vm1506_vm2, %v2240_v51  ;;  %2257 = vst.msk [vmem:[%s3007_s22 + $0x60] sm:$0xff] %vm1506_vm2, %v2241_v53  ;;  %v2230_v43 = vmul.f32 %v2877_v28, %v2214_v13  ;;  %v2231_v12 = vmul.f32 %v2877_v28, %v2215_v21 }
 0x355   : > { %v2232_v14 = vmul.f32 %v2877_v28, %v2216_v7  ;;  %v2233_v38 = vmul.f32 %v2877_v28, %v2217_v5  ;;  %2258 = vst.msk [vmem:[%s3007_s22 + $0x68] sm:$0xff] %vm1506_vm2, %v2242_v26  ;;  %2259 = vst.msk [vmem:[%s3007_s22 + $0x70] sm:$0xff] %vm1506_vm2, %v2243_v16  ;;  %v2234_v39 = vmul.f32 %v2877_v28, %v2218_v59 }
 0x356   : > { %2260 = vst.msk [vmem:[%s3007_s22 + $0x78] sm:$0xff] %vm1506_vm2, %v2244_v27  ;;  %v2235_v41 = vmul.f32 %v2877_v28, %v2219_v22  ;;  %v2236_v44 = vmul.f32 %v2877_v28, %v2220_v25  ;;  %2245 = vst.msk [vmem:[%s3007_s22] sm:$0xff] %vm1506_vm2, %v2229_v0 }
 0x357   : > { %2246 = vst.msk [vmem:[%s3007_s22 + $0x8] sm:$0xff] %vm1506_vm2, %v2230_v43  ;;  %2247 = vst.msk [vmem:[%s3007_s22 + $0x10] sm:$0xff] %vm1506_vm2, %v2231_v12 }
 0x358   : > { %2248 = vst.msk [vmem:[%s3007_s22 + $0x18] sm:$0xff] %vm1506_vm2, %v2232_v14  ;;  %2249 = vst.msk [vmem:[%s3007_s22 + $0x20] sm:$0xff] %vm1506_vm2, %v2233_v38 }
 0x359   : > { %2250 = vst.msk [vmem:[%s3007_s22 + $0x28] sm:$0xff] %vm1506_vm2, %v2234_v39  ;;  %2251 = vst.msk [vmem:[%s3007_s22 + $0x30] sm:$0xff] %vm1506_vm2, %v2235_v41 }
 0x35a   : > { %2252 = vst.msk [vmem:[%s3007_s22 + $0x38] sm:$0xff] %vm1506_vm2, %v2236_v44 }
 0x35b PF: > { %s21_s17 = sadd.s32 1, %s2884_s17  }
 0x35c   : > { %p18_p8 = scmp.ge.s32.totalorder %s21_s17, 6  }
 0x35e   :  { %20 = sbr.rel (!%p18_p8) target bundleno = 1 (0x1), region = 132 }

// kernel: caloc_resnet50_forward.5
= control target key start
LH: loop header
LB: loop body
LE: loop exit
PB: predicated region body
PF: predicated region fallthrough
CT: control target
= control target key end

     0   :  { %s1140_s0 = inlined_call_operand.vmem [shape: bf16[32,512], index: 0, kind: input, shape index: {}]   ;;  %s1141_s1 = inlined_call_operand.vmem [shape: bf16[512,64], index: 1, kind: input, shape index: {}]   ;;  %s1142_s2 = inlined_call_operand.vmem [shape: f32[1,64], index: 2, kind: input, shape index: {}]   ;;  %s1143_s3 = inlined_call_operand.vmem [shape: f32[1,64], index: 3, kind: input, shape index: {}]   ;;  %s1144_s4 = inlined_call_operand.vmem [shape: f32[64,64], index: 4, kind: input, shape index: {}]   ;;  %s1145_s5 = inlined_call_operand.vmem [shape: f32[1,64], index: 5, kind: input, shape index: {}]   ;;  %s1146_s6 = inlined_call_operand.vmem [shape: f32[64,6], index: 6, kind: input, shape index: {}]   ;;  %s1147_s7 = inlined_call_operand.vmem [shape: f32[1,6], index: 7, kind: input, shape index: {}]   ;;  %s1148_s8 = inlined_call_operand.hbm [shape: f32[2,6], index: 8, kind: output, shape index: {}]  }
   0x1   :  { %v837_v0 = vld [vmem:[%s1141_s1 + $0x78] sm:$0xff]   ;;  %v841_v4 = vld [vmem:[%s1141_s1 + $0x70] sm:$0xff]   ;;  %v845_v8 = vld [vmem:[%s1141_s1 + $0x68] sm:$0xff]  }
   0x2   :  { %v838_v1 = vld [vmem:[%s1141_s1 + $0xf8] sm:$0xff]   ;;  %722 = vmatprep.subr.bf16.mxu0 %v837_v0  ;;  %v842_v5 = vld [vmem:[%s1141_s1 + $0xf0] sm:$0xff]   ;;  %v846_v9 = vld [vmem:[%s1141_s1 + $0xe8] sm:$0xff]  }
   0x3   :  { %v839_v2 = vld [vmem:[%s1141_s1 + $0x38] sm:$0xff]   ;;  %750 = vmatprep.subr.bf16.mxu1 %v838_v1  ;;  %v843_v6 = vld [vmem:[%s1141_s1 + $0x30] sm:$0xff]   ;;  %v847_v10 = vld [vmem:[%s1141_s1 + $0x28] sm:$0xff]  }
   0x4   :  { %v840_v3 = vld [vmem:[%s1141_s1 + $0xb8] sm:$0xff]   ;;  %723 = vmatpush3.bf16.msra.mxu0 %v839_v2  ;;  %v844_v7 = vld [vmem:[%s1141_s1 + $0xb0] sm:$0xff]   ;;  %v848_v11 = vld [vmem:[%s1141_s1 + $0xa8] sm:$0xff]  }
   0x5   :  { %751 = vmatpush3.bf16.msra.mxu1 %v840_v3  ;;  %724 = vmatprep.subr.bf16.mxu0 %v841_v4  ;;  %v849_v12 = vld [vmem:[%s1141_s1 + $0x60] sm:$0xff]   ;;  %v853_v16 = vld [vmem:[%s1141_s1 + $0x58] sm:$0xff]   ;;  %v857_v20 = vld [vmem:[%s1141_s1 + $0x50] sm:$0xff]  }
   0x6   :  { %752 = vmatprep.subr.bf16.mxu1 %v842_v5  ;;  %v850_v13 = vld [vmem:[%s1141_s1 + $0xe0] sm:$0xff]   ;;  %v854_v17 = vld [vmem:[%s1141_s1 + $0xd8] sm:$0xff]   ;;  %v858_v21 = vld [vmem:[%s1141_s1 + $0xd0] sm:$0xff]  }
   0x7   :  { %v851_v14 = vld [vmem:[%s1141_s1 + $0x20] sm:$0xff]   ;;  %v855_v18 = vld [vmem:[%s1141_s1 + $0x18] sm:$0xff]   ;;  %v859_v22 = vld [vmem:[%s1141_s1 + $0x10] sm:$0xff]  }
   0x8   :  { %725 = vmatpush3.bf16.msra.mxu0 %v843_v6  ;;  %v852_v15 = vld [vmem:[%s1141_s1 + $0xa0] sm:$0xff]   ;;  %v856_v19 = vld [vmem:[%s1141_s1 + $0x98] sm:$0xff]   ;;  %v860_v23 = vld [vmem:[%s1141_s1 + $0x90] sm:$0xff]  }
   0x9   :  { %753 = vmatpush3.bf16.msra.mxu1 %v844_v7  ;;  %726 = vmatprep.subr.bf16.mxu0 %v845_v8  ;;  %v861_v24 = vld [vmem:[%s1141_s1 + $0x48] sm:$0xff]   ;;  %v865_v28 = vld [vmem:[%s1141_s1 + $0x40] sm:$0xff]  }
   0xa   :  { %754 = vmatprep.subr.bf16.mxu1 %v846_v9  ;;  %v862_v25 = vld [vmem:[%s1141_s1 + $0xc8] sm:$0xff]   ;;  %v866_v29 = vld [vmem:[%s1141_s1 + $0xc0] sm:$0xff]  }
   0xb   :  { %v863_v26 = vld [vmem:[%s1141_s1 + $0x8] sm:$0xff]   ;;  %v867_v30 = vld [vmem:[%s1141_s1] sm:$0xff]  }
   0xc   :  { %727 = vmatpush3.bf16.msra.mxu0 %v847_v10  ;;  %v864_v27 = vld [vmem:[%s1141_s1 + $0x88] sm:$0xff]   ;;  %v868_v31 = vld [vmem:[%s1141_s1 + $0x80] sm:$0xff]  }
   0xd   :  { %755 = vmatpush3.bf16.msra.mxu1 %v848_v11  ;;  %728 = vmatprep.subr.bf16.mxu0 %v849_v12  ;;  %v869_v32 = vld [vmem:[%s1140_s0] ss:$16 sps:$4 sm:$0xff]   ;;  %v871_v33 = vld [vmem:[%s1140_s0 + $0x4] ss:$16 sps:$4 sm:$0xff]   ;;  %v872_v34 = vld [vmem:[%s1140_s0 + $0x8] ss:$16 sps:$4 sm:$0xff]  }
   0xe   :  { %756 = vmatprep.subr.bf16.mxu1 %v850_v13  ;;  %v874_v35 = vld [vmem:[%s1140_s0 + $0xc] ss:$16 sps:$4 sm:$0xff]   ;;  %367 = vmatprep.mubr.bf16.mxu0 %v871_v33  ;;  %v875_v36 = vld [vmem:[%s1140_s0 + $0x24] ss:$16 sps:$4 sm:$0xff]  }
   0xf   :  { %416 = vmatprep.mubr.bf16.mxu1 %v874_v35  ;;  %v877_v37 = vld [vmem:[%s1140_s0 + $0x2c] ss:$16 sps:$4 sm:$0xff]  }
  0x10   :  { %729 = vmatpush3.bf16.msra.mxu0 %v851_v14 }
  0x11   :  { %757 = vmatpush3.bf16.msra.mxu1 %v852_v15  ;;  %730 = vmatprep.subr.bf16.mxu0 %v853_v16 }
  0x12   :  { %758 = vmatprep.subr.bf16.mxu1 %v854_v17 }
  0x14   :  { %731 = vmatpush3.bf16.msra.mxu0 %v855_v18 }
  0x15   :  { %759 = vmatpush3.bf16.msra.mxu1 %v856_v19  ;;  %732 = vmatprep.subr.bf16.mxu0 %v857_v20 }
  0x16   :  { %760 = vmatprep.subr.bf16.mxu1 %v858_v21 }
  0x18   :  { %733 = vmatpush3.bf16.msra.mxu0 %v859_v22 }
  0x19   :  { %761 = vmatpush3.bf16.msra.mxu1 %v860_v23  ;;  %734 = vmatprep.subr.bf16.mxu0 %v861_v24 }
  0x1a   :  { %762 = vmatprep.subr.bf16.mxu1 %v862_v25 }
  0x1c   :  { %735 = vmatpush3.bf16.msra.mxu0 %v863_v26 }
  0x1d   :  { %763 = vmatpush3.bf16.msra.mxu1 %v864_v27  ;;  %736 = vmatprep.subr.bf16.mxu0 %v865_v28 }
  0x1e   :  { %764 = vmatprep.subr.bf16.mxu1 %v866_v29 }
  0x20   :  { %737 = vmatpush3.bf16.msra.mxu0 %v867_v30 }
  0x21   :  { %765 = vmatpush3.bf16.msra.mxu1 %v868_v31 }
  0x23   :  { %368 = vmatmul.mubr.bf16.vlgmr.msra.gmra.mxu0 %v869_v32 }
  0x24   :  { %417 = vmatmul.mubr.bf16.vlgmr.msra.gmra.mxu1 %v872_v34  ;;  %375 = vmatprep.mubr.bf16.mxu0 %v875_v36 }
  0x25   :  { %13 = vsyncpa [#allocation3], 0  ;;  %424 = vmatprep.mubr.bf16.mxu1 %v877_v37  ;;  %v879_v38 = vld [vmem:[%s1140_s0 + $0x20] ss:$16 sps:$4 sm:$0xff]   ;;  %v880_v39 = vld [vmem:[%s1140_s0 + $0x28] ss:$16 sps:$4 sm:$0xff]  }
  0x26   :  { %v488_v40 = vld [vmem:[%s1144_s4 + $0x38] sm:$0xff]  ;;  %v903_v41 = vmov 0.0   ;;  %v487_v42 = vld [vmem:[%s1144_s4 + $0x30] sm:$0xff]  ;;  %vm904_vm0 = vmmov 0   ;;  %v486_v43 = vld [vmem:[%s1144_s4 + $0x28] sm:$0xff]  ;;  %vm459_vm1 = vcmask 523264  }
  0x27   :  { %796 = vmatprep.subr.mxu0 %v903_v41  ;;  %815 = vmatprep.subr.mxu1 %v903_v41  ;;  %v485_v44 = vld [vmem:[%s1144_s4 + $0x20] sm:$0xff]  ;;  %v484_v45 = vld [vmem:[%s1144_s4 + $0x18] sm:$0xff]  ;;  %v483_v46 = vld [vmem:[%s1144_s4 + $0x10] sm:$0xff]  ;;  %vm498_vm2 = vcmask 1041409   ;;  %s905_s30 = smov [#allocation2]   ;;  %vm660_vm3 = vcmask 41984  }
  0x28   :  { %797 = vmatpush3.msra.mxu0 %v488_v40  ;;  %v482_v47 = vld [vmem:[%s1144_s4 + $0x8] sm:$0xff]  ;;  %v481_v48 = vld [vmem:[%s1144_s4] sm:$0xff]  ;;  %v579_v49 = vld [vmem:[%s1146_s6 + $0x38] sm:$0xff]  ;;  %s668_s9 = sshll.u32 %s905_s30, 4  ;;  %s669_s9 = int_to_ptr.vmem [resolvable:$true] %s668_s9 }
  0x29   :  { %798 = vmatprep.subr.mxu0 %v903_v41  ;;  %v578_v50 = vld [vmem:[%s1146_s6 + $0x30] sm:$0xff]  ;;  %816 = vmatpush3.msra.mxu1 %v579_v49  ;;  %v577_v51 = vld [vmem:[%s1146_s6 + $0x28] sm:$0xff]  ;;  %v576_v52 = vld [vmem:[%s1146_s6 + $0x20] sm:$0xff]  ;;  %p886_p1 = scmp.lt.s32.totalorder %s669_s9, %s669_s9 }
  0x2a   :  { %799 = vmatpush3.msra.mxu0 %v487_v42  ;;  %817 = vmatprep.subr.mxu1 %v903_v41  ;;  %v575_v53 = vld [vmem:[%s1146_s6 + $0x18] sm:$0xff]  ;;  %v574_v54 = vld [vmem:[%s1146_s6 + $0x10] sm:$0xff]  ;;  %v573_v55 = vld [vmem:[%s1146_s6 + $0x8] sm:$0xff] }
  0x2b   :  { %376 = vmatmul.mubr.bf16.gmra.mxu0 %v879_v38  ;;  %800 = vmatprep.subr.mxu0 %v903_v41  ;;  %v716_v63 = vld [vmem:[%s1142_s2] ss:$0 sm:$0xff] }
  0x2c   :  { %425 = vmatmul.mubr.bf16.gmra.mxu1 %v880_v39  ;;  %812 = vmatprep.mubr.msk.f32.mxu0 %vm904_vm0, %v903_v41  ;;  %v717_v3 = vld [vmem:[%s1143_s3] ss:$0 sm:$0xff] }
  0x2d   :  { %831 = vmatprep.mubr.msk.f32.mxu1 %vm904_vm0, %v903_v41  ;;  %801 = vmatpush3.msra.mxu0 %v486_v43 }
  0x2e   :  { %802 = vmatprep.subr.mxu0 %v903_v41  ;;  %818 = vmatpush3.msra.mxu1 %v578_v50 }
  0x2f   :  { %803 = vmatpush3.msra.mxu0 %v485_v44  ;;  %819 = vmatprep.subr.mxu1 %v903_v41 }
  0x30   :  { %804 = vmatprep.subr.mxu0 %v903_v41  ;;  %820 = vmatpush3.msra.mxu1 %v577_v51 }
  0x31   :  { %805 = vmatpush3.msra.mxu0 %v484_v45  ;;  %821 = vmatprep.subr.mxu1 %v903_v41 }
  0x32   :  { %806 = vmatprep.subr.mxu0 %v903_v41  ;;  %822 = vmatpush3.msra.mxu1 %v576_v52 }
  0x33   :  { %807 = vmatpush3.msra.mxu0 %v483_v46  ;;  %823 = vmatprep.subr.mxu1 %v903_v41 }
  0x34   :  { %808 = vmatprep.subr.mxu0 %v903_v41  ;;  %824 = vmatpush3.msra.mxu1 %v575_v53 }
  0x35   :  { %809 = vmatpush3.msra.mxu0 %v482_v47  ;;  %825 = vmatprep.subr.mxu1 %v903_v41 }
  0x36   :  { %810 = vmatprep.subr.mxu0 %v903_v41  ;;  %826 = vmatpush3.msra.mxu1 %v574_v54 }
  0x37   :  { %811 = vmatpush3.msra.mxu0 %v481_v48  ;;  %827 = vmatprep.subr.mxu1 %v903_v41 }
  0x38   :  { %828 = vmatpush3.msra.mxu1 %v573_v55  ;;  %v572_v55 = vld [vmem:[%s1146_s6] sm:$0xff]  ;;  %s881_s6 = scalar_lea.vmem %s669_s9, 32 }
  0x39   :  { %829 = vmatprep.subr.mxu1 %v903_v41  ;;  %p882_p0 = scmp.ne.s32.totalorder %s669_s9, %s881_s6  ;;  %p887_p2 = scmp.lt.s32.totalorder %s881_s6, %s881_s6 }
  0x3a   :  { %830 = vmatpush3.msra.mxu1 %v572_v55 }
  0x3b   :  { %p888_p3 = por %p887_p2, %p886_p1 }
  0x3d   :  { %p889_p4 = pnand %p888_p3, %p882_p0 }
  0xe3   :  { %v738_v56 = vpop.f32.mrf.mxu0 }
  0xe4   :  { %v766_v57 = vpop.f32.mrf.mxu1 }
  0xe5   :  { %v739_v58 = vpop.f32.mrf.mxu0 }
  0xe6   :  { %v740_v59 = vadd.f32 %v739_v58, %v738_v56  ;;  %v767_v60 = vpop.f32.mrf.mxu1  ;;  %v718_v56 = vld [vmem:[%s1145_s5] ss:$0 sm:$0xff] }
  0xe7   :  { %v768_v61 = vadd.f32 %v767_v60, %v766_v57  ;;  %v741_v62 = vpop.f32.mrf.mxu0  ;;  %v720_v60 = vld [vmem:[%s1147_s7] ss:$0 sm:$0xff] }
  0xe8   :  { %v769_v0 = vpop.f32.mrf.mxu1 }
  0xe9   :  { %v419_v1 = vadd.f32 %v768_v61, %v740_v59  ;;  %v742_v2 = vpop.f32.mrf.mxu0 }
  0xea   :  { %v743_v4 = vadd.f32 %v742_v2, %v741_v62  ;;  %v770_v5 = vpop.f32.mrf.mxu1 }
  0xeb   :  { %v440_v6 = vmul.f32 %v716_v63, %v419_v1  ;;  %v771_v7 = vadd.f32 %v770_v5, %v769_v0  ;;  %v744_v8 = vpop.f32.mrf.mxu0 }
  0xec   :  { %v772_v9 = vpop.f32.mrf.mxu1 }
  0xed   :  { %v451_v10 = vadd.f32 %v717_v3, %v440_v6  ;;  %v422_v11 = vadd.f32 %v771_v7, %v743_v4  ;;  %v745_v12 = vpop.f32.mrf.mxu0 }
  0xee   :  { %v746_v13 = vadd.f32 %v745_v12, %v744_v8  ;;  %v773_v14 = vpop.f32.mrf.mxu1 }
  0xef   :  { %v441_v15 = vmul.f32 %v716_v63, %v422_v11  ;;  %v774_v16 = vadd.f32 %v773_v14, %v772_v9  ;;  %v747_v17 = vpop.f32.mrf.mxu0  ;;  %v455_v19 = vmax.f32 %v451_v10, 0.0 }
  0xf0   :  { %v775_v18 = vpop.f32.mrf.mxu1 }
  0xf1   :  { %v452_v20 = vadd.f32 %v717_v3, %v441_v15  ;;  %v427_v21 = vadd.f32 %v774_v16, %v746_v13  ;;  %v748_v22 = vpop.f32.mrf.mxu0  ;;  %v460_v30 = vsel %vm459_vm1, %v455_v19, 0.0 }
  0xf2   :  { %v749_v23 = vadd.f32 %v748_v22, %v747_v17  ;;  %v776_v24 = vpop.f32.mrf.mxu1 }
  0xf3   :  { %v456_v25 = vmax.f32 %v452_v20, 0.0  ;;  %v442_v26 = vmul.f32 %v716_v63, %v427_v21  ;;  %v777_v27 = vadd.f32 %v776_v24, %v775_v18 }
  0xf5   :  { %v453_v28 = vadd.f32 %v717_v3, %v442_v26  ;;  %v430_v29 = vadd.f32 %v777_v27, %v749_v23  ;;  %v461_v31 = vsel %vm459_vm1, %v456_v25, 0.0 }
  0xf6   :  { %v462_v32 = vadd.f32 %v461_v31, %v460_v30 }
  0xf7   :  { %v443_v33 = vmul.f32 %v716_v63, %v430_v29  ;;  %v457_v35 = vmax.f32 %v453_v28, 0.0 }
  0xf8   :  { %v463_v34 = vrot.slane %v462_v32, 4 }
  0xf9   :  { %v454_v36 = vadd.f32 %v717_v3, %v443_v33  ;;  %v469_v40 = vsel %vm459_vm1, %v457_v35, 0.0 }
  0xfa   :  { %v464_v37 = vadd.f32 %v463_v34, %v462_v32 }
  0xfb   :  { %v458_v38 = vmax.f32 %v454_v36, 0.0 }
  0xfc   :  { %v465_v39 = vrot.slane %v464_v37, 2 }
  0xfd   :  { %v470_v41 = vsel %vm459_vm1, %v458_v38, 0.0 }
  0xfe   :  { %v471_v42 = vadd.f32 %v470_v41, %v469_v40  ;;  %v466_v43 = vadd.f32 %v465_v39, %v464_v37 }
 0x100   :  { %v472_v44 = vrot.slane %v471_v42, 4  ;;  %v467_v46 = vrot.slane %v466_v43, 1 }
 0x102   :  { %v473_v45 = vadd.f32 %v472_v44, %v471_v42  ;;  %v468_v49 = vadd.f32 %v467_v46, %v466_v43 }
 0x104   :  { %v474_v47 = vrot.slane %v473_v45, 2  ;;  %v479_v52 = vmul.f32 0.0625, %v468_v49 }
 0x106   :  { %v475_v48 = vadd.f32 %v474_v47, %v473_v45 }
 0x108   :  { %v476_v50 = vrot.slane %v475_v48, 1 }
 0x10a   :  { %v477_v51 = vadd.f32 %v476_v50, %v475_v48 }
 0x10c   :  { %v480_v53 = vmul.f32 0.0625, %v477_v51 }
 0x10e   :  { %v499_v54 = vsel %vm498_vm2, %v480_v53, %v479_v52 }
 0x10f   :  { %813 = vmatmul.mubr.msk.f32.vlgmr.msra.gmra.mxu0 %vm459_vm1, %v499_v54 }
 0x1cf   :  { %v568_v57 = vpop.f32.mrf.mxu0 }
 0x1d0   :  { %v569_v58 = vadd.f32 %v718_v56, %v568_v57 }
 0x1d1   :  { %v814_v59 = vpop.f32.mrf.mxu0 }
 0x1d2   :  { %832 = vmatmul.mubr.msk.f32.vlgmr.msra.gmra.mxu1 %vm459_vm1, %v569_v58 }
 0x292   :  { %v656_v61 = vpop.f32.mrf.mxu1 }
 0x293   :  { %v657_v62 = vadd.f32 %v720_v60, %v656_v61 }
 0x294   :  { %v833_v63 = vpop.f32.mrf.mxu1 }
 0x295   :  { %661 = vst.msk [vmem:[#allocation2] sm:$0x3] %vm660_vm3, %v657_v62 }
 0x296   :  { %892 = shalt.err (!%p889_p4)
}
 0x297   :  { %671 = dma.vmem_to_hbm [thread:$0]  %s669_s9, 32, %s1148_s8, [#allocation3]  }
 0x298   :  { %901 = dma.done.wait [#allocation3], 32  }
 0x299   :  { %902 = vsyncadd [#allocation3], 4294967264 }
 0x29a   :  { %675 = vsyncpa [#allocation3], 1 }

</bundles_post_ra>
